<compile_context>
chip_gen: v7x
topology: tpu7x:2x2x1
jax: 0.10.0
libtpu: 0.0.40
codegen_flags: <defaults>
</compile_context>

<pallas_src>
import functools
import math

import numpy as np
import jax
import jax.numpy as jnp
from jax import lax
from jax.experimental import pallas as pl
from jax.experimental.pallas import tpu as pltpu

NEG_INF = -1e30  # additive mask value (kept in f32; never cast to bf16)
VMEM_LIMIT = 48 * 1024 * 1024  # explicit scoped-VMEM budget (safe on v5e/v6e/v7x)


def _layer_norm(x, w, b, eps=1e-5):
    mu = jnp.mean(x, axis=-1, keepdims=True)
    xc = x - mu
    var = jnp.mean(xc * xc, axis=-1, keepdims=True)
    return xc * lax.rsqrt(var + eps) * w + b


# ----------------------------------------------------------------------------
# Pallas kernels
# ----------------------------------------------------------------------------
def transformer_layers_kernel(x_ref, pad_ref,
                              wqkv_ref, bqkv_ref, wo_ref, bo_ref,
                              ln1w_ref, ln1b_ref, w1_ref, b1_ref,
                              w2_ref, b2_ref, ln2w_ref, ln2b_ref,
                              o_ref, x_acc, mask_acc, *, num_heads):
    """All encoder layers for one batch-block; grid = (batch_blocks, layer)."""
    layer = pl.program_id(1)
    Bt, L, D = x_acc.shape
    dh = D // num_heads
    scale = 1.0 / math.sqrt(dh)

    # Load the embedded input and build the causal+pad additive mask ONCE per
    # batch-block; both stay resident in VMEM across the "arbitrary" layer axis.
    @pl.when(layer == 0)
    def _():
        x_acc[...] = x_ref[...]
        rows = lax.broadcasted_iota(jnp.int32, (L, L), 0)
        cols = lax.broadcasted_iota(jnp.int32, (L, L), 1)
        causal = jnp.where(cols > rows, NEG_INF, 0.0).astype(jnp.float32)
        mask_acc[...] = causal[None] + pad_ref[...]          # (Bt, L, L) f32

    x = x_acc[...].reshape(Bt * L, D)                        # f32, fat M = Bt*L
    xb = x.astype(jnp.bfloat16)

    # Fused Q/K/V projection: one (Bt*L, D) x (D, 3D) bf16 MXU matmul.
    qkv = jnp.dot(xb, wqkv_ref[0], preferred_element_type=jnp.float32) + bqkv_ref[0]

    # TODO(synk): for realistic L (>=512) use flash-style KV-block tiling with an
    # online softmax instead of materializing (L, L) scores per head.
    attn_rows = []
    for b in range(Bt):                                      # static, small Bt
        rs = b * L
        q_b = qkv[rs:rs + L, 0:D]
        k_b = qkv[rs:rs + L, D:2 * D]
        v_b = qkv[rs:rs + L, 2 * D:3 * D]
        # Heads are contiguous 128-lane slices; stack them into a head-batched
        # (H, L, dh) operand so the attention matmuls are single batched einsums.
        qh = jnp.stack([q_b[:, h * dh:(h + 1) * dh] for h in range(num_heads)],
                       axis=0).astype(jnp.bfloat16)
        kh = jnp.stack([k_b[:, h * dh:(h + 1) * dh] for h in range(num_heads)],
                       axis=0).astype(jnp.bfloat16)
        vh = jnp.stack([v_b[:, h * dh:(h + 1) * dh] for h in range(num_heads)],
                       axis=0).astype(jnp.bfloat16)
        s = jnp.einsum('hqd,hkd->hqk', qh, kh,
                       preferred_element_type=jnp.float32) * scale + mask_acc[b][None]
        m = jnp.max(s, axis=-1, keepdims=True)
        p = jnp.exp(s - m)
        p = p * pl.reciprocal(jnp.sum(p, axis=-1, keepdims=True), approx=True)
        o = jnp.einsum('hqk,hkd->hqd', p.astype(jnp.bfloat16), vh,
                       preferred_element_type=jnp.float32)    # (H, L, dh)
        attn_rows.append(
            jnp.concatenate([o[h] for h in range(num_heads)], axis=-1))
    o_heads = jnp.concatenate(attn_rows, axis=0)              # (Bt*L, D) f32

    # Fused attention output projection.
    attn = jnp.dot(o_heads.astype(jnp.bfloat16), wo_ref[0],
                   preferred_element_type=jnp.float32) + bo_ref[0]

    # Residual + LayerNorm 1 (post-norm, nn.TransformerEncoderLayer default).
    x1 = _layer_norm(x + attn, ln1w_ref[0], ln1b_ref[0])

    # Feed-forward (relu, dim_feedforward == d_model in the module).
    h1 = jnp.maximum(
        jnp.dot(x1.astype(jnp.bfloat16), w1_ref[0],
                preferred_element_type=jnp.float32) + b1_ref[0], 0.0)
    ff = jnp.dot(h1.astype(jnp.bfloat16), w2_ref[0],
                 preferred_element_type=jnp.float32) + b2_ref[0]

    # Residual + LayerNorm 2.
    x2 = _layer_norm(x1 + ff, ln2w_ref[0], ln2b_ref[0])

    x_acc[...] = x2.reshape(Bt, L, D)

    @pl.when(layer == pl.num_programs(1) - 1)
    def _():
        # Emit bf16 (reference rounds x to bf16 before the vocab projection
        # anyway) -> halves the inter-kernel HBM traffic.
        o_ref[...] = x2.reshape(Bt, L, D).astype(o_ref.dtype)


def output_kernel(x_ref, w_ref, b_ref, o_ref):
    """Final vocabulary projection, tiled over (V-tiles, M-tiles)."""
    o_ref[...] = (jnp.dot(x_ref[...], w_ref[...],
                          preferred_element_type=jnp.float32) + b_ref[...])


# ----------------------------------------------------------------------------
# Pallas wrappers
# ----------------------------------------------------------------------------
def transformer_layers(x, pad_add, params, num_heads, *, batch_block=None):
    B, L, D = x.shape
    NL = params['wqkv'].shape[0]
    Bt = B if batch_block is None else batch_block
    assert B % Bt == 0

    def w_spec(arr):
        nd = arr.ndim
        return pl.BlockSpec((1,) + arr.shape[1:],
                            lambda bb, l, _nd=nd: (l,) + (0,) * (_nd - 1))

    in_specs = [
        pl.BlockSpec((Bt, L, D), lambda bb, l: (bb, 0, 0)),   # x (used at layer 0)
        pl.BlockSpec((Bt, 1, L), lambda bb, l: (bb, 0, 0)),   # additive pad row
        w_spec(params['wqkv']), w_spec(params['bqkv']),
        w_spec(params['wo']), w_spec(params['bo']),
        w_spec(params['ln1w']), w_spec(params['ln1b']),
        w_spec(params['w1']), w_spec(params['b1']),
        w_spec(params['w2']), w_spec(params['b2']),
        w_spec(params['ln2w']), w_spec(params['ln2b']),
    ]
    # TODO(synk): at very large d_model on v7x (64 MiB VMEM) tile wo/w1/w2 over
    # their output dim (extra grid axis or emit_pipeline) instead of streaming
    # whole (D, D) blocks.
    kernel = functools.partial(transformer_layers_kernel, num_heads=num_heads)
    return pl.pallas_call(
        kernel,
        out_shape=jax.ShapeDtypeStruct((B, L, D), jnp.bfloat16),
        grid_spec=pltpu.PrefetchScalarGridSpec(
            num_scalar_prefetch=0,
            grid=(B // Bt, NL),
            in_specs=in_specs,
            out_specs=pl.BlockSpec((Bt, L, D), lambda bb, l: (bb, 0, 0)),
            scratch_shapes=[pltpu.VMEM((Bt, L, D), jnp.float32),   # resident x
                            pltpu.VMEM((Bt, L, L), jnp.float32)]),  # add. mask
        compiler_params=pltpu.CompilerParams(
            dimension_semantics=("parallel", "arbitrary"),
            vmem_limit_bytes=VMEM_LIMIT),
    )(x, pad_add,
      params['wqkv'], params['bqkv'], params['wo'], params['bo'],
      params['ln1w'], params['ln1b'], params['w1'], params['b1'],
      params['w2'], params['b2'], params['ln2w'], params['ln2b'])


def output_projection(x2d, wout, bout, *, tile_m=256, tile_v=512):
    """x2d: (B*L, D) bf16 -> (B*L, V) f32 logits."""
    M, D = x2d.shape
    V = wout.shape[1]
    TM = M if M <= tile_m else tile_m
    TV = V if V <= tile_v else tile_v
    assert M % TM == 0 and V % TV == 0
    # V-tile axis OUTER so each (D, TV) wout tile is DMA'd exactly once while
    # the (much smaller) x tiles cycle on the inner M axis.
    return pl.pallas_call(
        output_kernel,
        out_shape=jax.ShapeDtypeStruct((M, V), jnp.float32),
        grid_spec=pltpu.PrefetchScalarGridSpec(
            num_scalar_prefetch=0,
            grid=(V // TV, M // TM),
            in_specs=[pl.BlockSpec((TM, D), lambda jv, im: (im, 0)),
                      pl.BlockSpec((D, TV), lambda jv, im: (0, jv)),
                      pl.BlockSpec((1, TV), lambda jv, im: (0, jv))],
            out_specs=pl.BlockSpec((TM, TV), lambda jv, im: (im, jv))),
        compiler_params=pltpu.CompilerParams(
            dimension_semantics=("parallel", "parallel"),
            vmem_limit_bytes=VMEM_LIMIT),
    )(x2d, wout, bout)


# ----------------------------------------------------------------------------
# Glue (embedding gather, pad-mask row construction)
# ----------------------------------------------------------------------------
def build_pad_additive(B, L, attention_mask):
    """(B, 1, L) additive key-padding row: 0 = attend, NEG_INF = padding."""
    if attention_mask is None:
        return jnp.zeros((B, 1, L), jnp.float32)
    pad = jnp.logical_not(attention_mask.astype(bool))
    return jnp.where(pad[:, None, :], NEG_INF, 0.0).astype(jnp.float32)


def transformer_forward(tokens, attention_mask, params, num_heads):
    B, L = tokens.shape
    # TODO(synk): the embedding gather stays in JAX (scatter/gather, not hot path).
    x = (params['emb'][tokens] + params['pos'][:L][None]).astype(jnp.float32)
    pad_add = build_pad_additive(B, L, attention_mask)
    x = transformer_layers(x, pad_add, params, num_heads)         # (B, L, D) bf16
    D = x.shape[-1]
    V = params['wout'].shape[1]
    logits = output_projection(x.reshape(B * L, D), params['wout'], params['bout'])
    return logits.reshape(B, L, V)


# ----------------------------------------------------------------------------
# Pure-JAX reference (same params, same bf16 operand rounding) for sanity check
# ----------------------------------------------------------------------------
def _bf16_round(x):
    return x.astype(jnp.bfloat16).astype(jnp.float32)


def reference_forward(tokens, attention_mask, params, num_heads):
    B, L = tokens.shape
    D = params['emb'].shape[1]
    dh = D // num_heads
    NL = params['wqkv'].shape[0]
    hp = lax.Precision.HIGHEST
    f32 = jnp.float32

    x = (params['emb'][tokens] + params['pos'][:L][None]).astype(f32)
    causal = jnp.where(jnp.triu(jnp.ones((L, L), bool), 1), NEG_INF, 0.0).astype(f32)
    mask = causal[None] + build_pad_additive(B, L, attention_mask)   # (B, L, L)
    scale = 1.0 / math.sqrt(dh)

    for l in range(NL):
        wqkv = params['wqkv'][l].astype(f32)
        wo = params['wo'][l].astype(f32)
        w1 = params['w1'][l].astype(f32)
        w2 = params['w2'][l].astype(f32)

        xb = _bf16_round(x)
        qkv = jnp.einsum('bld,de->ble', xb, wqkv, precision=hp) + params['bqkv'][l]
        q, k, v = qkv[..., :D], qkv[..., D:2 * D], qkv[..., 2 * D:]

        qh = _bf16_round(q).reshape(B, L, num_heads, dh)
        kh = _bf16_round(k).reshape(B, L, num_heads, dh)
        vh = _bf16_round(v).reshape(B, L, num_heads, dh)
        s = jnp.einsum('blhe,bmhe->bhlm', qh, kh, precision=hp) * scale + mask[:, None]
        p = jax.nn.softmax(s, axis=-1)
        o = jnp.einsum('bhlm,bmhe->blhe', _bf16_round(p), vh,
                       precision=hp).reshape(B, L, D)
        attn = jnp.einsum('bld,de->ble', _bf16_round(o), wo,
                          precision=hp) + params['bo'][l]

        x1 = _layer_norm(x + attn, params['ln1w'][l], params['ln1b'][l])
        h1 = jax.nn.relu(jnp.einsum('bld,df->blf', _bf16_round(x1), w1,
                                    precision=hp) + params['b1'][l])
        ff = jnp.einsum('blf,fd->bld', _bf16_round(h1), w2,
                        precision=hp) + params['b2'][l]
        x = _layer_norm(x1 + ff, params['ln2w'][l], params['ln2b'][l])

    return (jnp.einsum('bld,dv->blv', _bf16_round(x), params['wout'].astype(f32),
                       precision=hp) + params['bout'])


# ----------------------------------------------------------------------------
# Deterministic parameter init (synthetic weights; shapes follow the module).
# Layer weights are stacked with a leading (num_layers, ...) axis; Q/K/V are
# fused into one (D, 3D) weight; matmul weights are bf16, biases / LN f32.
# TODO(synk): optional fp8 weight quantization (per-channel scales) on v7x.
# ----------------------------------------------------------------------------
def init_params(key, vocab_size, d_model, num_heads, num_layers, max_len=1024):
    d_ff = d_model  # nn.TransformerEncoderLayer(dim_feedforward=d_model)
    keys = iter(jax.random.split(key, 4 + 12 * num_layers))
    bf16 = jnp.bfloat16

    def rnd(shape, scale=0.02, dtype=jnp.float32):
        return (scale * jax.random.normal(next(keys), shape)).astype(dtype)

    params = {
        'emb': rnd((vocab_size, d_model), 1.0),
        'pos': rnd((max_len, d_model), 1.0),
    }
    names = ['wqkv', 'bqkv', 'wo', 'bo', 'ln1w', 'ln1b',
             'w1', 'b1', 'w2', 'b2', 'ln2w', 'ln2b']
    acc = {n: [] for n in names}
    for _ in range(num_layers):
        acc['wqkv'].append(rnd((d_model, 3 * d_model), dtype=bf16))
        acc['bqkv'].append(rnd((1, 3 * d_model)))
        acc['wo'].append(rnd((d_model, d_model), dtype=bf16))
        acc['bo'].append(rnd((1, d_model)))
        acc['ln1w'].append(jnp.ones((1, d_model), jnp.float32))
        acc['ln1b'].append(jnp.zeros((1, d_model), jnp.float32))
        acc['w1'].append(rnd((d_model, d_ff), dtype=bf16))
        acc['b1'].append(rnd((1, d_ff)))
        acc['w2'].append(rnd((d_ff, d_model), dtype=bf16))
        acc['b2'].append(rnd((1, d_model)))
        acc['ln2w'].append(jnp.ones((1, d_model), jnp.float32))
        acc['ln2b'].append(jnp.zeros((1, d_model), jnp.float32))
    for n in names:
        params[n] = jnp.stack(acc[n])
    params['wout'] = rnd((d_model, vocab_size), dtype=bf16)
    params['bout'] = rnd((1, vocab_size))
    return params


if __name__ == "__main__":
    # Small but lane-aligned shapes (d_model, head_dim, vocab multiples of 128).
    vocab_size = 128
    d_model = 256
    num_heads = 2
    num_layers = 2
    B, L = 2, 16

    key = jax.random.PRNGKey(0)
    pkey, tkey = jax.random.split(key)
    params = init_params(pkey, vocab_size, d_model, num_heads, num_layers)
    tokens = jax.random.randint(tkey, (B, L), 0, vocab_size, dtype=jnp.int32)

    # Second sequence has its last 5 positions padded (exercises key-padding mask).
    lengths = jnp.array([L, L - 5], dtype=jnp.int32)
    attention_mask = (jnp.arange(L)[None, :] < lengths[:, None]).astype(jnp.int32)

    logits = transformer_forward(tokens, attention_mask, params, num_heads)
    logits = jax.block_until_ready(logits)
    assert logits.shape == (B, L, vocab_size)

    ref = jax.block_until_ready(
        reference_forward(tokens, attention_mask, params, num_heads))
    np.testing.assert_allclose(np.asarray(logits), np.asarray(ref),
                               rtol=2e-2, atol=2e-2)
    print("KERNEL_OK")
</pallas_src>

<mosaic_0001>
module attributes {stable_mosaic.version = 11 : i64} {
  func.func @transformer_layers_kernel(%arg0: i32, %arg1: i32, %arg2: memref<2x16x256xf32, #tpu.memory_space<vmem>>, %arg3: memref<2x1x16xf32, #tpu.memory_space<vmem>>, %arg4: memref<1x256x768xbf16, #tpu.memory_space<vmem>>, %arg5: memref<1x1x768xf32, #tpu.memory_space<vmem>>, %arg6: memref<1x256x256xbf16, #tpu.memory_space<vmem>>, %arg7: memref<1x1x256xf32, #tpu.memory_space<vmem>>, %arg8: memref<1x1x256xf32, #tpu.memory_space<vmem>>, %arg9: memref<1x1x256xf32, #tpu.memory_space<vmem>>, %arg10: memref<1x256x256xbf16, #tpu.memory_space<vmem>>, %arg11: memref<1x1x256xf32, #tpu.memory_space<vmem>>, %arg12: memref<1x256x256xbf16, #tpu.memory_space<vmem>>, %arg13: memref<1x1x256xf32, #tpu.memory_space<vmem>>, %arg14: memref<1x1x256xf32, #tpu.memory_space<vmem>>, %arg15: memref<1x1x256xf32, #tpu.memory_space<vmem>>, %arg16: memref<2x16x256xbf16, #tpu.memory_space<vmem>>, %arg17: memref<2x16x256xf32, #tpu.memory_space<vmem>>, %arg18: memref<2x16x16xf32, #tpu.memory_space<vmem>>) attributes {dimension_semantics = [#tpu.dimension_semantics<parallel>, #tpu.dimension_semantics<arbitrary>], iteration_bounds = array<i64: 1, 2>, scalar_prefetch = 0 : i64, scratch_operands = 2 : i64, tpu.core_type = #tpu.core_type<tc>, window_params = [{transform_indices = @transform_0, window_bounds = array<i64: 2, 16, 256>}, {transform_indices = @transform_1, window_bounds = array<i64: 2, 1, 16>}, {transform_indices = @transform_2, window_bounds = array<i64: 1, 256, 768>}, {transform_indices = @transform_3, window_bounds = array<i64: 1, 1, 768>}, {transform_indices = @transform_4, window_bounds = array<i64: 1, 256, 256>}, {transform_indices = @transform_5, window_bounds = array<i64: 1, 1, 256>}, {transform_indices = @transform_6, window_bounds = array<i64: 1, 1, 256>}, {transform_indices = @transform_7, window_bounds = array<i64: 1, 1, 256>}, {transform_indices = @transform_8, window_bounds = array<i64: 1, 256, 256>}, {transform_indices = @transform_9, window_bounds = array<i64: 1, 1, 256>}, {transform_indices = @transform_10, window_bounds = array<i64: 1, 256, 256>}, {transform_indices = @transform_11, window_bounds = array<i64: 1, 1, 256>}, {transform_indices = @transform_12, window_bounds = array<i64: 1, 1, 256>}, {transform_indices = @transform_13, window_bounds = array<i64: 1, 1, 256>}, {transform_indices = @transform_14, window_bounds = array<i64: 2, 16, 256>}]} {
    %c0_i32 = arith.constant 0 : i32
    %0 = arith.cmpi eq, %arg1, %c0_i32 : i32
    %1 = arith.extui %0 : i1 to i32
    %c0_i32_0 = arith.constant 0 : i32
    %2 = arith.cmpi ne, %1, %c0_i32_0 : i32
    scf.if %2 {
      %c0_72 = arith.constant 0 : index
      %c0_73 = arith.constant 0 : index
      %c0_74 = arith.constant 0 : index
      %187 = vector.load %arg2[%c0_72, %c0_73, %c0_74] : memref<2x16x256xf32, #tpu.memory_space<vmem>>, vector<2x16x256xf32>
      %c0_75 = arith.constant 0 : index
      %c0_76 = arith.constant 0 : index
      %c0_77 = arith.constant 0 : index
      %188 = vector.load %arg17[%c0_75, %c0_76, %c0_77] : memref<2x16x256xf32, #tpu.memory_space<vmem>>, vector<2x16x256xf32>
      tpu.vector_store %arg17[%c0_75, %c0_76, %c0_77], %187 {strides = array<i32>} : memref<2x16x256xf32, #tpu.memory_space<vmem>>, vector<2x16x256xf32>,
      %189 = tpu.iota {dimensions = array<i32: 0>} : vector<16x16xi32>
      %190 = tpu.iota {dimensions = array<i32: 1>} : vector<16x16xi32>
      %191 = arith.cmpi sgt, %190, %189 : vector<16x16xi32>
      %cst_78 = arith.constant -1.000000e+30 : f32
      %cst_79 = arith.constant 0.000000e+00 : f32
      %192 = vector.broadcast %cst_78 : f32 to vector<16x16xf32>
      %193 = vector.broadcast %cst_79 : f32 to vector<16x16xf32>
      %194 = arith.select %191, %192, %193 : vector<16x16xi1>, vector<16x16xf32>
      %195 = vector.shape_cast %194 : vector<16x16xf32> to vector<1x16x16xf32>
      %c0_80 = arith.constant 0 : index
      %c0_81 = arith.constant 0 : index
      %c0_82 = arith.constant 0 : index
      %196 = vector.load %arg3[%c0_80, %c0_81, %c0_82] : memref<2x1x16xf32, #tpu.memory_space<vmem>>, vector<2x1x16xf32>
      %197 = vector.broadcast %195 : vector<1x16x16xf32> to vector<2x16x16xf32>
      %198 = vector.broadcast %196 : vector<2x1x16xf32> to vector<2x16x16xf32>
      %199 = arith.addf %197, %198 : vector<2x16x16xf32>
      %c0_83 = arith.constant 0 : index
      %c0_84 = arith.constant 0 : index
      %c0_85 = arith.constant 0 : index
      %200 = vector.load %arg18[%c0_83, %c0_84, %c0_85] : memref<2x16x16xf32, #tpu.memory_space<vmem>>, vector<2x16x16xf32>
      tpu.vector_store %arg18[%c0_83, %c0_84, %c0_85], %199 {strides = array<i32>} : memref<2x16x16xf32, #tpu.memory_space<vmem>>, vector<2x16x16xf32>,
    } else {
    }
    %c0 = arith.constant 0 : index
    %c0_1 = arith.constant 0 : index
    %c0_2 = arith.constant 0 : index
    %3 = vector.load %arg17[%c0, %c0_1, %c0_2] : memref<2x16x256xf32, #tpu.memory_space<vmem>>, vector<2x16x256xf32>
    %4 = vector.shape_cast %3 : vector<2x16x256xf32> to vector<32x256xf32>
    %5 = arith.truncf %4 : vector<32x256xf32> to vector<32x256xbf16>
    %c0_3 = arith.constant 0 : index
    %c0_4 = arith.constant 0 : index
    %c0_5 = arith.constant 0 : index
    %6 = vector.load %arg4[%c0_3, %c0_4, %c0_5] : memref<1x256x768xbf16, #tpu.memory_space<vmem>>, vector<1x256x768xbf16>
    %7 = vector.shape_cast %6 : vector<1x256x768xbf16> to vector<256x768xbf16>
    %cst = arith.constant dense<0.000000e+00> : vector<32x768xf32>
    %8 = tpu.matmul %5, %7, %cst {dimension_numbers = #tpu.dot_dimension_numbers<[1], [0], [0], [1], [0, 0, 1, 1], [], []>} : vector<32x256xbf16>, vector<256x768xbf16>, vector<32x768xf32> -> vector<32x768xf32>
    %c0_6 = arith.constant 0 : index
    %c0_7 = arith.constant 0 : index
    %c0_8 = arith.constant 0 : index
    %9 = vector.load %arg5[%c0_6, %c0_7, %c0_8] : memref<1x1x768xf32, #tpu.memory_space<vmem>>, vector<1x1x768xf32>
    %10 = vector.shape_cast %9 : vector<1x1x768xf32> to vector<1x768xf32>
    %11 = vector.broadcast %10 : vector<1x768xf32> to vector<32x768xf32>
    %12 = arith.addf %8, %11 : vector<32x768xf32>
    %13 = vector.extract_strided_slice %12 {offsets = [0, 0], sizes = [16, 256], strides = [1, 1]} : vector<32x768xf32> to vector<16x256xf32>
    %14 = vector.extract_strided_slice %12 {offsets = [0, 256], sizes = [16, 256], strides = [1, 1]} : vector<32x768xf32> to vector<16x256xf32>
    %15 = vector.extract_strided_slice %12 {offsets = [0, 512], sizes = [16, 256], strides = [1, 1]} : vector<32x768xf32> to vector<16x256xf32>
    %16 = vector.extract_strided_slice %13 {offsets = [0, 0], sizes = [16, 128], strides = [1, 1]} : vector<16x256xf32> to vector<16x128xf32>
    %17 = vector.extract_strided_slice %13 {offsets = [0, 128], sizes = [16, 128], strides = [1, 1]} : vector<16x256xf32> to vector<16x128xf32>
    %18 = vector.shape_cast %16 : vector<16x128xf32> to vector<1x16x128xf32>
    %19 = vector.shape_cast %17 : vector<16x128xf32> to vector<1x16x128xf32>
    %20 = tpu.concatenate %18, %19 in 0 : vector<1x16x128xf32>, vector<1x16x128xf32> -> vector<2x16x128xf32>
    %21 = arith.truncf %20 : vector<2x16x128xf32> to vector<2x16x128xbf16>
    %22 = vector.extract_strided_slice %14 {offsets = [0, 0], sizes = [16, 128], strides = [1, 1]} : vector<16x256xf32> to vector<16x128xf32>
    %23 = vector.extract_strided_slice %14 {offsets = [0, 128], sizes = [16, 128], strides = [1, 1]} : vector<16x256xf32> to vector<16x128xf32>
    %24 = vector.shape_cast %22 : vector<16x128xf32> to vector<1x16x128xf32>
    %25 = vector.shape_cast %23 : vector<16x128xf32> to vector<1x16x128xf32>
    %26 = tpu.concatenate %24, %25 in 0 : vector<1x16x128xf32>, vector<1x16x128xf32> -> vector<2x16x128xf32>
    %27 = arith.truncf %26 : vector<2x16x128xf32> to vector<2x16x128xbf16>
    %28 = vector.extract_strided_slice %15 {offsets = [0, 0], sizes = [16, 128], strides = [1, 1]} : vector<16x256xf32> to vector<16x128xf32>
    %29 = vector.extract_strided_slice %15 {offsets = [0, 128], sizes = [16, 128], strides = [1, 1]} : vector<16x256xf32> to vector<16x128xf32>
    %30 = vector.shape_cast %28 : vector<16x128xf32> to vector<1x16x128xf32>
    %31 = vector.shape_cast %29 : vector<16x128xf32> to vector<1x16x128xf32>
    %32 = tpu.concatenate %30, %31 in 0 : vector<1x16x128xf32>, vector<1x16x128xf32> -> vector<2x16x128xf32>
    %33 = arith.truncf %32 : vector<2x16x128xf32> to vector<2x16x128xbf16>
    "tpu.trace_start"() <{level = 10 : i32, message = "hqd,hkd->hqk"}> : () -> ()
    %cst_9 = arith.constant dense<0.000000e+00> : vector<2x16x16xf32>
    %34 = tpu.matmul %21, %27, %cst_9 {dimension_numbers = #tpu.dot_dimension_numbers<[2], [2], [1], [1], [0, 0, 0, 1, 1, 1], [0], [0]>} : vector<2x16x128xbf16>, vector<2x16x128xbf16>, vector<2x16x16xf32> -> vector<2x16x16xf32>
    "tpu.trace_stop"() : () -> ()
    %cst_10 = arith.constant 0.0883883461 : f32
    %35 = vector.broadcast %cst_10 : f32 to vector<2x16x16xf32>
    %36 = arith.mulf %34, %35 : vector<2x16x16xf32>
    %c0_11 = arith.constant 0 : index
    %c0_12 = arith.constant 0 : index
    %c0_13 = arith.constant 0 : index
    %37 = vector.load %arg18[%c0_11, %c0_12, %c0_13] : memref<2x16x16xf32, #tpu.memory_space<vmem>>, vector<1x16x16xf32>
    %38 = vector.shape_cast %37 : vector<1x16x16xf32> to vector<16x16xf32>
    %39 = vector.shape_cast %38 : vector<16x16xf32> to vector<1x16x16xf32>
    %40 = vector.broadcast %39 : vector<1x16x16xf32> to vector<2x16x16xf32>
    %41 = arith.addf %36, %40 : vector<2x16x16xf32>
    %cst_14 = arith.constant dense<0xFF800000> : vector<2x16xf32>
    %42 = vector.multi_reduction <maximumf>, %41, %cst_14 [2] : vector<2x16x16xf32> to vector<2x16xf32>
    %43 = vector.shape_cast %42 : vector<2x16xf32> to vector<2x16x1xf32>
    %44 = vector.broadcast %43 : vector<2x16x1xf32> to vector<2x16x16xf32>
    %45 = arith.subf %41, %44 : vector<2x16x16xf32>
    %46 = math.exp %45 : vector<2x16x16xf32>
    %cst_15 = arith.constant dense<0.000000e+00> : vector<2x16xf32>
    %47 = vector.multi_reduction <add>, %46, %cst_15 [2] : vector<2x16x16xf32> to vector<2x16xf32>
    %48 = vector.shape_cast %47 : vector<2x16xf32> to vector<2x16x1xf32>
    %49 = tpu.reciprocal %48 {approx = true} : vector<2x16x1xf32> -> vector<2x16x1xf32>
    %50 = vector.broadcast %49 : vector<2x16x1xf32> to vector<2x16x16xf32>
    %51 = arith.mulf %46, %50 : vector<2x16x16xf32>
    %52 = arith.truncf %51 : vector<2x16x16xf32> to vector<2x16x16xbf16>
    "tpu.trace_start"() <{level = 10 : i32, message = "hqk,hkd->hqd"}> : () -> ()
    %cst_16 = arith.constant dense<0.000000e+00> : vector<2x16x128xf32>
    %53 = tpu.matmul %52, %33, %cst_16 {dimension_numbers = #tpu.dot_dimension_numbers<[2], [1], [1], [2], [0, 0, 0, 1, 1, 2], [0], [0]>} : vector<2x16x16xbf16>, vector<2x16x128xbf16>, vector<2x16x128xf32> -> vector<2x16x128xf32>
    "tpu.trace_stop"() : () -> ()
    %54 = vector.extract_strided_slice %53 {offsets = [0, 0, 0], sizes = [1, 16, 128], strides = [1, 1, 1]} : vector<2x16x128xf32> to vector<1x16x128xf32>
    %55 = vector.shape_cast %54 : vector<1x16x128xf32> to vector<16x128xf32>
    %56 = vector.extract_strided_slice %53 {offsets = [1, 0, 0], sizes = [1, 16, 128], strides = [1, 1, 1]} : vector<2x16x128xf32> to vector<1x16x128xf32>
    %57 = vector.shape_cast %56 : vector<1x16x128xf32> to vector<16x128xf32>
    %58 = tpu.concatenate %55, %57 in 1 : vector<16x128xf32>, vector<16x128xf32> -> vector<16x256xf32>
    %59 = vector.extract_strided_slice %12 {offsets = [16, 0], sizes = [16, 256], strides = [1, 1]} : vector<32x768xf32> to vector<16x256xf32>
    %60 = vector.extract_strided_slice %12 {offsets = [16, 256], sizes = [16, 256], strides = [1, 1]} : vector<32x768xf32> to vector<16x256xf32>
    %61 = vector.extract_strided_slice %12 {offsets = [16, 512], sizes = [16, 256], strides = [1, 1]} : vector<32x768xf32> to vector<16x256xf32>
    %62 = vector.extract_strided_slice %59 {offsets = [0, 0], sizes = [16, 128], strides = [1, 1]} : vector<16x256xf32> to vector<16x128xf32>
    %63 = vector.extract_strided_slice %59 {offsets = [0, 128], sizes = [16, 128], strides = [1, 1]} : vector<16x256xf32> to vector<16x128xf32>
    %64 = vector.shape_cast %62 : vector<16x128xf32> to vector<1x16x128xf32>
    %65 = vector.shape_cast %63 : vector<16x128xf32> to vector<1x16x128xf32>
    %66 = tpu.concatenate %64, %65 in 0 : vector<1x16x128xf32>, vector<1x16x128xf32> -> vector<2x16x128xf32>
    %67 = arith.truncf %66 : vector<2x16x128xf32> to vector<2x16x128xbf16>
    %68 = vector.extract_strided_slice %60 {offsets = [0, 0], sizes = [16, 128], strides = [1, 1]} : vector<16x256xf32> to vector<16x128xf32>
    %69 = vector.extract_strided_slice %60 {offsets = [0, 128], sizes = [16, 128], strides = [1, 1]} : vector<16x256xf32> to vector<16x128xf32>
    %70 = vector.shape_cast %68 : vector<16x128xf32> to vector<1x16x128xf32>
    %71 = vector.shape_cast %69 : vector<16x128xf32> to vector<1x16x128xf32>
    %72 = tpu.concatenate %70, %71 in 0 : vector<1x16x128xf32>, vector<1x16x128xf32> -> vector<2x16x128xf32>
    %73 = arith.truncf %72 : vector<2x16x128xf32> to vector<2x16x128xbf16>
    %74 = vector.extract_strided_slice %61 {offsets = [0, 0], sizes = [16, 128], strides = [1, 1]} : vector<16x256xf32> to vector<16x128xf32>
    %75 = vector.extract_strided_slice %61 {offsets = [0, 128], sizes = [16, 128], strides = [1, 1]} : vector<16x256xf32> to vector<16x128xf32>
    %76 = vector.shape_cast %74 : vector<16x128xf32> to vector<1x16x128xf32>
    %77 = vector.shape_cast %75 : vector<16x128xf32> to vector<1x16x128xf32>
    %78 = tpu.concatenate %76, %77 in 0 : vector<1x16x128xf32>, vector<1x16x128xf32> -> vector<2x16x128xf32>
    %79 = arith.truncf %78 : vector<2x16x128xf32> to vector<2x16x128xbf16>
    "tpu.trace_start"() <{level = 10 : i32, message = "hqd,hkd->hqk"}> : () -> ()
    %cst_17 = arith.constant dense<0.000000e+00> : vector<2x16x16xf32>
    %80 = tpu.matmul %67, %73, %cst_17 {dimension_numbers = #tpu.dot_dimension_numbers<[2], [2], [1], [1], [0, 0, 0, 1, 1, 1], [0], [0]>} : vector<2x16x128xbf16>, vector<2x16x128xbf16>, vector<2x16x16xf32> -> vector<2x16x16xf32>
    "tpu.trace_stop"() : () -> ()
    %cst_18 = arith.constant 0.0883883461 : f32
    %81 = vector.broadcast %cst_18 : f32 to vector<2x16x16xf32>
    %82 = arith.mulf %80, %81 : vector<2x16x16xf32>
    %c1 = arith.constant 1 : index
    %c0_19 = arith.constant 0 : index
    %c0_20 = arith.constant 0 : index
    %83 = vector.load %arg18[%c1, %c0_19, %c0_20] : memref<2x16x16xf32, #tpu.memory_space<vmem>>, vector<1x16x16xf32>
    %84 = vector.shape_cast %83 : vector<1x16x16xf32> to vector<16x16xf32>
    %85 = vector.shape_cast %84 : vector<16x16xf32> to vector<1x16x16xf32>
    %86 = vector.broadcast %85 : vector<1x16x16xf32> to vector<2x16x16xf32>
    %87 = arith.addf %82, %86 : vector<2x16x16xf32>
    %cst_21 = arith.constant dense<0xFF800000> : vector<2x16xf32>
    %88 = vector.multi_reduction <maximumf>, %87, %cst_21 [2] : vector<2x16x16xf32> to vector<2x16xf32>
    %89 = vector.shape_cast %88 : vector<2x16xf32> to vector<2x16x1xf32>
    %90 = vector.broadcast %89 : vector<2x16x1xf32> to vector<2x16x16xf32>
    %91 = arith.subf %87, %90 : vector<2x16x16xf32>
    %92 = math.exp %91 : vector<2x16x16xf32>
    %cst_22 = arith.constant dense<0.000000e+00> : vector<2x16xf32>
    %93 = vector.multi_reduction <add>, %92, %cst_22 [2] : vector<2x16x16xf32> to vector<2x16xf32>
    %94 = vector.shape_cast %93 : vector<2x16xf32> to vector<2x16x1xf32>
    %95 = tpu.reciprocal %94 {approx = true} : vector<2x16x1xf32> -> vector<2x16x1xf32>
    %96 = vector.broadcast %95 : vector<2x16x1xf32> to vector<2x16x16xf32>
    %97 = arith.mulf %92, %96 : vector<2x16x16xf32>
    %98 = arith.truncf %97 : vector<2x16x16xf32> to vector<2x16x16xbf16>
    "tpu.trace_start"() <{level = 10 : i32, message = "hqk,hkd->hqd"}> : () -> ()
    %cst_23 = arith.constant dense<0.000000e+00> : vector<2x16x128xf32>
    %99 = tpu.matmul %98, %79, %cst_23 {dimension_numbers = #tpu.dot_dimension_numbers<[2], [1], [1], [2], [0, 0, 0, 1, 1, 2], [0], [0]>} : vector<2x16x16xbf16>, vector<2x16x128xbf16>, vector<2x16x128xf32> -> vector<2x16x128xf32>
    "tpu.trace_stop"() : () -> ()
    %100 = vector.extract_strided_slice %99 {offsets = [0, 0, 0], sizes = [1, 16, 128], strides = [1, 1, 1]} : vector<2x16x128xf32> to vector<1x16x128xf32>
    %101 = vector.shape_cast %100 : vector<1x16x128xf32> to vector<16x128xf32>
    %102 = vector.extract_strided_slice %99 {offsets = [1, 0, 0], sizes = [1, 16, 128], strides = [1, 1, 1]} : vector<2x16x128xf32> to vector<1x16x128xf32>
    %103 = vector.shape_cast %102 : vector<1x16x128xf32> to vector<16x128xf32>
    %104 = tpu.concatenate %101, %103 in 1 : vector<16x128xf32>, vector<16x128xf32> -> vector<16x256xf32>
    %105 = tpu.concatenate %58, %104 in 0 : vector<16x256xf32>, vector<16x256xf32> -> vector<32x256xf32>
    %106 = arith.truncf %105 : vector<32x256xf32> to vector<32x256xbf16>
    %c0_24 = arith.constant 0 : index
    %c0_25 = arith.constant 0 : index
    %c0_26 = arith.constant 0 : index
    %107 = vector.load %arg6[%c0_24, %c0_25, %c0_26] : memref<1x256x256xbf16, #tpu.memory_space<vmem>>, vector<1x256x256xbf16>
    %108 = vector.shape_cast %107 : vector<1x256x256xbf16> to vector<256x256xbf16>
    %cst_27 = arith.constant dense<0.000000e+00> : vector<32x256xf32>
    %109 = tpu.matmul %106, %108, %cst_27 {dimension_numbers = #tpu.dot_dimension_numbers<[1], [0], [0], [1], [0, 0, 1, 1], [], []>} : vector<32x256xbf16>, vector<256x256xbf16>, vector<32x256xf32> -> vector<32x256xf32>
    %c0_28 = arith.constant 0 : index
    %c0_29 = arith.constant 0 : index
    %c0_30 = arith.constant 0 : index
    %110 = vector.load %arg7[%c0_28, %c0_29, %c0_30] : memref<1x1x256xf32, #tpu.memory_space<vmem>>, vector<1x1x256xf32>
    %111 = vector.shape_cast %110 : vector<1x1x256xf32> to vector<1x256xf32>
    %112 = vector.broadcast %111 : vector<1x256xf32> to vector<32x256xf32>
    %113 = arith.addf %109, %112 : vector<32x256xf32>
    %114 = arith.addf %4, %113 : vector<32x256xf32>
    %c0_31 = arith.constant 0 : index
    %c0_32 = arith.constant 0 : index
    %c0_33 = arith.constant 0 : index
    %115 = vector.load %arg8[%c0_31, %c0_32, %c0_33] : memref<1x1x256xf32, #tpu.memory_space<vmem>>, vector<1x1x256xf32>
    %116 = vector.shape_cast %115 : vector<1x1x256xf32> to vector<1x256xf32>
    %c0_34 = arith.constant 0 : index
    %c0_35 = arith.constant 0 : index
    %c0_36 = arith.constant 0 : index
    %117 = vector.load %arg9[%c0_34, %c0_35, %c0_36] : memref<1x1x256xf32, #tpu.memory_space<vmem>>, vector<1x1x256xf32>
    %118 = vector.shape_cast %117 : vector<1x1x256xf32> to vector<1x256xf32>
    %cst_37 = arith.constant dense<0.000000e+00> : vector<32xf32>
    %119 = vector.multi_reduction <add>, %114, %cst_37 [1] : vector<32x256xf32> to vector<32xf32>
    %120 = vector.shape_cast %119 : vector<32xf32> to vector<32x1xf32>
    %cst_38 = arith.constant 2.560000e+02 : f32
    %121 = vector.broadcast %cst_38 : f32 to vector<32x1xf32>
    %122 = arith.divf %120, %121 : vector<32x1xf32>
    %123 = vector.broadcast %122 : vector<32x1xf32> to vector<32x256xf32>
    %124 = arith.subf %114, %123 : vector<32x256xf32>
    %125 = arith.mulf %124, %124 : vector<32x256xf32>
    %cst_39 = arith.constant dense<0.000000e+00> : vector<32xf32>
    %126 = vector.multi_reduction <add>, %125, %cst_39 [1] : vector<32x256xf32> to vector<32xf32>
    %127 = vector.shape_cast %126 : vector<32xf32> to vector<32x1xf32>
    %cst_40 = arith.constant 2.560000e+02 : f32
    %128 = vector.broadcast %cst_40 : f32 to vector<32x1xf32>
    %129 = arith.divf %127, %128 : vector<32x1xf32>
    %cst_41 = arith.constant 9.99999974E-6 : f32
    %130 = vector.broadcast %cst_41 : f32 to vector<32x1xf32>
    %131 = arith.addf %129, %130 : vector<32x1xf32>
    %132 = math.rsqrt %131 : vector<32x1xf32>
    %133 = vector.broadcast %132 : vector<32x1xf32> to vector<32x256xf32>
    %134 = arith.mulf %124, %133 : vector<32x256xf32>
    %135 = vector.broadcast %116 : vector<1x256xf32> to vector<32x256xf32>
    %136 = arith.mulf %134, %135 : vector<32x256xf32>
    %137 = vector.broadcast %118 : vector<1x256xf32> to vector<32x256xf32>
    %138 = arith.addf %136, %137 : vector<32x256xf32>
    %139 = arith.truncf %138 : vector<32x256xf32> to vector<32x256xbf16>
    %c0_42 = arith.constant 0 : index
    %c0_43 = arith.constant 0 : index
    %c0_44 = arith.constant 0 : index
    %140 = vector.load %arg10[%c0_42, %c0_43, %c0_44] : memref<1x256x256xbf16, #tpu.memory_space<vmem>>, vector<1x256x256xbf16>
    %141 = vector.shape_cast %140 : vector<1x256x256xbf16> to vector<256x256xbf16>
    %cst_45 = arith.constant dense<0.000000e+00> : vector<32x256xf32>
    %142 = tpu.matmul %139, %141, %cst_45 {dimension_numbers = #tpu.dot_dimension_numbers<[1], [0], [0], [1], [0, 0, 1, 1], [], []>} : vector<32x256xbf16>, vector<256x256xbf16>, vector<32x256xf32> -> vector<32x256xf32>
    %c0_46 = arith.constant 0 : index
    %c0_47 = arith.constant 0 : index
    %c0_48 = arith.constant 0 : index
    %143 = vector.load %arg11[%c0_46, %c0_47, %c0_48] : memref<1x1x256xf32, #tpu.memory_space<vmem>>, vector<1x1x256xf32>
    %144 = vector.shape_cast %143 : vector<1x1x256xf32> to vector<1x256xf32>
    %145 = vector.broadcast %144 : vector<1x256xf32> to vector<32x256xf32>
    %146 = arith.addf %142, %145 : vector<32x256xf32>
    %cst_49 = arith.constant 0.000000e+00 : f32
    %147 = vector.broadcast %cst_49 : f32 to vector<32x256xf32>
    %148 = arith.maximumf %146, %147 : vector<32x256xf32>
    %149 = arith.truncf %148 : vector<32x256xf32> to vector<32x256xbf16>
    %c0_50 = arith.constant 0 : index
    %c0_51 = arith.constant 0 : index
    %c0_52 = arith.constant 0 : index
    %150 = vector.load %arg12[%c0_50, %c0_51, %c0_52] : memref<1x256x256xbf16, #tpu.memory_space<vmem>>, vector<1x256x256xbf16>
    %151 = vector.shape_cast %150 : vector<1x256x256xbf16> to vector<256x256xbf16>
    %cst_53 = arith.constant dense<0.000000e+00> : vector<32x256xf32>
    %152 = tpu.matmul %149, %151, %cst_53 {dimension_numbers = #tpu.dot_dimension_numbers<[1], [0], [0], [1], [0, 0, 1, 1], [], []>} : vector<32x256xbf16>, vector<256x256xbf16>, vector<32x256xf32> -> vector<32x256xf32>
    %c0_54 = arith.constant 0 : index
    %c0_55 = arith.constant 0 : index
    %c0_56 = arith.constant 0 : index
    %153 = vector.load %arg13[%c0_54, %c0_55, %c0_56] : memref<1x1x256xf32, #tpu.memory_space<vmem>>, vector<1x1x256xf32>
    %154 = vector.shape_cast %153 : vector<1x1x256xf32> to vector<1x256xf32>
    %155 = vector.broadcast %154 : vector<1x256xf32> to vector<32x256xf32>
    %156 = arith.addf %152, %155 : vector<32x256xf32>
    %157 = arith.addf %138, %156 : vector<32x256xf32>
    %c0_57 = arith.constant 0 : index
    %c0_58 = arith.constant 0 : index
    %c0_59 = arith.constant 0 : index
    %158 = vector.load %arg14[%c0_57, %c0_58, %c0_59] : memref<1x1x256xf32, #tpu.memory_space<vmem>>, vector<1x1x256xf32>
    %159 = vector.shape_cast %158 : vector<1x1x256xf32> to vector<1x256xf32>
    %c0_60 = arith.constant 0 : index
    %c0_61 = arith.constant 0 : index
    %c0_62 = arith.constant 0 : index
    %160 = vector.load %arg15[%c0_60, %c0_61, %c0_62] : memref<1x1x256xf32, #tpu.memory_space<vmem>>, vector<1x1x256xf32>
    %161 = vector.shape_cast %160 : vector<1x1x256xf32> to vector<1x256xf32>
    %cst_63 = arith.constant dense<0.000000e+00> : vector<32xf32>
    %162 = vector.multi_reduction <add>, %157, %cst_63 [1] : vector<32x256xf32> to vector<32xf32>
    %163 = vector.shape_cast %162 : vector<32xf32> to vector<32x1xf32>
    %cst_64 = arith.constant 2.560000e+02 : f32
    %164 = vector.broadcast %cst_64 : f32 to vector<32x1xf32>
    %165 = arith.divf %163, %164 : vector<32x1xf32>
    %166 = vector.broadcast %165 : vector<32x1xf32> to vector<32x256xf32>
    %167 = arith.subf %157, %166 : vector<32x256xf32>
    %168 = arith.mulf %167, %167 : vector<32x256xf32>
    %cst_65 = arith.constant dense<0.000000e+00> : vector<32xf32>
    %169 = vector.multi_reduction <add>, %168, %cst_65 [1] : vector<32x256xf32> to vector<32xf32>
    %170 = vector.shape_cast %169 : vector<32xf32> to vector<32x1xf32>
    %cst_66 = arith.constant 2.560000e+02 : f32
    %171 = vector.broadcast %cst_66 : f32 to vector<32x1xf32>
    %172 = arith.divf %170, %171 : vector<32x1xf32>
    %cst_67 = arith.constant 9.99999974E-6 : f32
    %173 = vector.broadcast %cst_67 : f32 to vector<32x1xf32>
    %174 = arith.addf %172, %173 : vector<32x1xf32>
    %175 = math.rsqrt %174 : vector<32x1xf32>
    %176 = vector.broadcast %175 : vector<32x1xf32> to vector<32x256xf32>
    %177 = arith.mulf %167, %176 : vector<32x256xf32>
    %178 = vector.broadcast %159 : vector<1x256xf32> to vector<32x256xf32>
    %179 = arith.mulf %177, %178 : vector<32x256xf32>
    %180 = vector.broadcast %161 : vector<1x256xf32> to vector<32x256xf32>
    %181 = arith.addf %179, %180 : vector<32x256xf32>
    %182 = vector.shape_cast %181 : vector<32x256xf32> to vector<2x16x256xf32>
    %c0_68 = arith.constant 0 : index
    %c0_69 = arith.constant 0 : index
    %c0_70 = arith.constant 0 : index
    %183 = vector.load %arg17[%c0_68, %c0_69, %c0_70] : memref<2x16x256xf32, #tpu.memory_space<vmem>>, vector<2x16x256xf32>
    tpu.vector_store %arg17[%c0_68, %c0_69, %c0_70], %182 {strides = array<i32>} : memref<2x16x256xf32, #tpu.memory_space<vmem>>, vector<2x16x256xf32>,
    %c1_i32 = arith.constant 1 : i32
    %184 = arith.cmpi eq, %arg1, %c1_i32 : i32
    %185 = arith.extui %184 : i1 to i32
    %c0_i32_71 = arith.constant 0 : i32
    %186 = arith.cmpi ne, %185, %c0_i32_71 : i32
    scf.if %186 {
      %187 = vector.shape_cast %181 : vector<32x256xf32> to vector<2x16x256xf32>
      %188 = arith.truncf %187 : vector<2x16x256xf32> to vector<2x16x256xbf16>
      %c0_72 = arith.constant 0 : index
      %c0_73 = arith.constant 0 : index
      %c0_74 = arith.constant 0 : index
      %189 = vector.load %arg16[%c0_72, %c0_73, %c0_74] : memref<2x16x256xbf16, #tpu.memory_space<vmem>>, vector<2x16x256xbf16>
      tpu.vector_store %arg16[%c0_72, %c0_73, %c0_74], %188 {strides = array<i32>} : memref<2x16x256xbf16, #tpu.memory_space<vmem>>, vector<2x16x256xbf16>,
    } else {
    }
    return
  }
  func.func @transform_0(%arg0: i32, %arg1: i32) -> (i32, i32, i32) {
    %c0_i32 = arith.constant 0 : i32
    %c0_i32_0 = arith.constant 0 : i32
    %c0_i32_1 = arith.constant 0 : i32
    return %arg0, %c0_i32, %c0_i32_0 : i32, i32, i32
  }
  func.func @transform_1(%arg0: i32, %arg1: i32) -> (i32, i32, i32) {
    %c0_i32 = arith.constant 0 : i32
    %c0_i32_0 = arith.constant 0 : i32
    %c0_i32_1 = arith.constant 0 : i32
    return %arg0, %c0_i32, %c0_i32_0 : i32, i32, i32
  }
  func.func @transform_2(%arg0: i32, %arg1: i32) -> (i32, i32, i32) {
    %c0_i32 = arith.constant 0 : i32
    %c0_i32_0 = arith.constant 0 : i32
    %c0_i32_1 = arith.constant 0 : i32
    return %arg1, %c0_i32, %c0_i32_0 : i32, i32, i32
  }
  func.func @transform_3(%arg0: i32, %arg1: i32) -> (i32, i32, i32) {
    %c0_i32 = arith.constant 0 : i32
    %c0_i32_0 = arith.constant 0 : i32
    %c0_i32_1 = arith.constant 0 : i32
    return %arg1, %c0_i32, %c0_i32_0 : i32, i32, i32
  }
  func.func @transform_4(%arg0: i32, %arg1: i32) -> (i32, i32, i32) {
    %c0_i32 = arith.constant 0 : i32
    %c0_i32_0 = arith.constant 0 : i32
    %c0_i32_1 = arith.constant 0 : i32
    return %arg1, %c0_i32, %c0_i32_0 : i32, i32, i32
  }
  func.func @transform_5(%arg0: i32, %arg1: i32) -> (i32, i32, i32) {
    %c0_i32 = arith.constant 0 : i32
    %c0_i32_0 = arith.constant 0 : i32
    %c0_i32_1 = arith.constant 0 : i32
    return %arg1, %c0_i32, %c0_i32_0 : i32, i32, i32
  }
  func.func @transform_6(%arg0: i32, %arg1: i32) -> (i32, i32, i32) {
    %c0_i32 = arith.constant 0 : i32
    %c0_i32_0 = arith.constant 0 : i32
    %c0_i32_1 = arith.constant 0 : i32
    return %arg1, %c0_i32, %c0_i32_0 : i32, i32, i32
  }
  func.func @transform_7(%arg0: i32, %arg1: i32) -> (i32, i32, i32) {
    %c0_i32 = arith.constant 0 : i32
    %c0_i32_0 = arith.constant 0 : i32
    %c0_i32_1 = arith.constant 0 : i32
    return %arg1, %c0_i32, %c0_i32_0 : i32, i32, i32
  }
  func.func @transform_8(%arg0: i32, %arg1: i32) -> (i32, i32, i32) {
    %c0_i32 = arith.constant 0 : i32
    %c0_i32_0 = arith.constant 0 : i32
    %c0_i32_1 = arith.constant 0 : i32
    return %arg1, %c0_i32, %c0_i32_0 : i32, i32, i32
  }
  func.func @transform_9(%arg0: i32, %arg1: i32) -> (i32, i32, i32) {
    %c0_i32 = arith.constant 0 : i32
    %c0_i32_0 = arith.constant 0 : i32
    %c0_i32_1 = arith.constant 0 : i32
    return %arg1, %c0_i32, %c0_i32_0 : i32, i32, i32
  }
  func.func @transform_10(%arg0: i32, %arg1: i32) -> (i32, i32, i32) {
    %c0_i32 = arith.constant 0 : i32
    %c0_i32_0 = arith.constant 0 : i32
    %c0_i32_1 = arith.constant 0 : i32
    return %arg1, %c0_i32, %c0_i32_0 : i32, i32, i32
  }
  func.func @transform_11(%arg0: i32, %arg1: i32) -> (i32, i32, i32) {
    %c0_i32 = arith.constant 0 : i32
    %c0_i32_0 = arith.constant 0 : i32
    %c0_i32_1 = arith.constant 0 : i32
    return %arg1, %c0_i32, %c0_i32_0 : i32, i32, i32
  }
  func.func @transform_12(%arg0: i32, %arg1: i32) -> (i32, i32, i32) {
    %c0_i32 = arith.constant 0 : i32
    %c0_i32_0 = arith.constant 0 : i32
    %c0_i32_1 = arith.constant 0 : i32
    return %arg1, %c0_i32, %c0_i32_0 : i32, i32, i32
  }
  func.func @transform_13(%arg0: i32, %arg1: i32) -> (i32, i32, i32) {
    %c0_i32 = arith.constant 0 : i32
    %c0_i32_0 = arith.constant 0 : i32
    %c0_i32_1 = arith.constant 0 : i32
    return %arg1, %c0_i32, %c0_i32_0 : i32, i32, i32
  }
  func.func @transform_14(%arg0: i32, %arg1: i32) -> (i32, i32, i32) {
    %c0_i32 = arith.constant 0 : i32
    %c0_i32_0 = arith.constant 0 : i32
    %c0_i32_1 = arith.constant 0 : i32
    return %arg0, %c0_i32, %c0_i32_0 : i32, i32, i32
  }
}

</mosaic_0001>

<bundles_post_ra>
// kernel: tpu_custom_call.1
= control target key start
LH: loop header
LB: loop body
LE: loop exit
PB: predicated region body
PF: predicated region fallthrough
CT: control target
= control target key end

     0   :  { %s5507_s0 = inlined_call_operand.hbm [shape: f32[2,16,256], index: 0, kind: input, shape index: {}]   ;;  %s5508_s1 = inlined_call_operand.vmem [shape: f32[2,1,16], index: 1, kind: input, shape index: {}]   ;;  %s5509_s2 = inlined_call_operand.hbm [shape: bf16[2,256,768], index: 2, kind: input, shape index: {}]   ;;  %s5510_s3 = inlined_call_operand.hbm [shape: f32[2,1,768], index: 3, kind: input, shape index: {}]   ;;  %s5511_s4 = inlined_call_operand.hbm [shape: bf16[2,256,256], index: 4, kind: input, shape index: {}]   ;;  %s5512_s5 = inlined_call_operand.vmem [shape: f32[2,1,256], index: 5, kind: input, shape index: {}]   ;;  %s5513_s6 = inlined_call_operand.vmem [shape: f32[2,1,256], index: 6, kind: input, shape index: {}]   ;;  %s5514_s7 = inlined_call_operand.vmem [shape: f32[2,1,256], index: 7, kind: input, shape index: {}]   ;;  %s5515_s8 = inlined_call_operand.hbm [shape: bf16[2,256,256], index: 8, kind: input, shape index: {}]   ;;  %s5516_s9 = inlined_call_operand.vmem [shape: f32[2,1,256], index: 9, kind: input, shape index: {}]   ;;  %s5517_s10 = inlined_call_operand.hbm [shape: bf16[2,256,256], index: 10, kind: input, shape index: {}]   ;;  %s5518_s11 = inlined_call_operand.vmem [shape: f32[2,1,256], index: 11, kind: input, shape index: {}]   ;;  %s5519_s12 = inlined_call_operand.vmem [shape: f32[2,1,256], index: 12, kind: input, shape index: {}]   ;;  %s5520_s13 = inlined_call_operand.vmem [shape: f32[2,1,256], index: 13, kind: input, shape index: {}]   ;;  %s5521_s14 = inlined_call_operand.hbm [shape: bf16[2,16,256], index: 14, kind: output, shape index: {}]  }
   0x1   :  { %5542 = sst [smem:[#allocation28_spill]] %s5507_s0 }
   0x2   :  { %5543 = sst [smem:[#allocation29_spill]] %s5508_s1 }
   0x3   :  { %5544 = sst [smem:[#allocation30_spill]] %s5509_s2 }
   0x4   :  { %5545 = sst [smem:[#allocation31_spill]] %s5510_s3 }
   0x5   :  { %5546 = sst [smem:[#allocation32_spill]] %s5511_s4 }
   0x6   :  { %5547 = sst [smem:[#allocation33_spill]] %s5512_s5 }
   0x7   :  { %5548 = sst [smem:[#allocation34_spill]] %s5513_s6 }
   0x8   :  { %5549 = sst [smem:[#allocation35_spill]] %s5514_s7 }
   0x9   :  { %5550 = sst [smem:[#allocation36_spill]] %s5515_s8 }
   0xa   :  { %5551 = sst [smem:[#allocation37_spill]] %s5516_s9 }
   0xb   :  { %5552 = sst [smem:[#allocation38_spill]] %s5517_s10 }
   0xc   :  { %5553 = sst [smem:[#allocation39_spill]] %s5518_s11 }
   0xd   :  { %5554 = sst [smem:[#allocation40_spill]] %s5519_s12 }
   0xe   :  { %5555 = sst [smem:[#allocation41_spill]] %s5520_s13 }
   0xf   :  { %5556 = sst [smem:[#allocation42_spill]] %s5521_s14 }
  0x10   :  { %19 = vsyncpa [#allocation5], 0 }
  0x11   :  { %20 = vsyncpa [#allocation8], 0 }
  0x12   :  { %22 = vsyncpa [#allocation8 + $0x1], 0 }
  0x13   :  { %23 = vsyncpa [#allocation11], 0 }
  0x14   :  { %25 = vsyncpa [#allocation11 + $0x1], 0 }
  0x15   :  { %26 = vsyncpa [#allocation14], 0 }
  0x16   :  { %28 = vsyncpa [#allocation14 + $0x1], 0 }
  0x17   :  { %29 = vsyncpa [#allocation6], 0  ;;  %s4551_s29 = smov 0   ;;  %s4553_s30 = smov 0  }
  0x18   :  { %s4555_s15 = smov 0   ;;  %s4557_s16 = smov 0  }
  0x19   :  { %s4559_s17 = smov 0   ;;  %s4561_s18 = smov 0  }
  0x1a LB: > { %5557 = sst [smem:[#allocation21_spill]] %s4444_s15  ;;  %s44_s19 = sadd.s32 1, %s4452_s17  ;;  %s4456_s18 = sphi %s4561_s18, %s35_s18   ;;  %s4452_s17 = sphi %s4559_s17, %s5609_s17   ;;  %s4448_s16 = sphi %s4557_s16, %s5608_s16   ;;  %s4444_s15 = sphi %s4555_s15, %s5607_s15   ;;  %s4440_s30 = sphi %s4553_s30, %s5611_s30   ;;  %s4436_s29 = sphi %s4551_s29, %s5610_s29  }
  0x1b   : > { %5558 = sst [smem:[#allocation22_spill]] %s4448_s16  ;;  %s106_s20 = sadd.s32 1, %s4444_s15 }
  0x1c   : > { %5559 = sst [smem:[#allocation23_spill]] %s4452_s17  ;;  %p45_p0 = scmp.ge.s32.totalorder %s44_s19, 2 }
  0x1d   : > { %5560 = sst [smem:[#allocation24_spill]] %s4456_s18  ;;  %p113_p1 = scmp.ne.s32.totalorder %s4444_s15, %s4440_s30 }
  0x1e   : > { %p114_p2 = scmp.eq.s32.totalorder %s4456_s18, 0  ;;  %s5613_s19 = smov (%p45_p0, %s44_s19), 0 }
  0x1f   : > { %5561 = sst [smem:[#allocation25_spill]] %s5613_s19  ;;  %p3783_p4 = scmp.lt.s32.totalorder %s4456_s18, 2 }
  0x20   : > { %p115_p3 = por %p114_p2, %p113_p1  ;;  %s103_s21 = ssub.s32 %s4452_s17, %s5613_s19 }
  0x21   : > { %p104_p5 = scmp.eq.s32.totalorder %s103_s21, 0  ;;  %s4593_s23 = sand.u32 1, %s4444_s15  }
  0x22   : > { %s3739_s24 = smul.u32 12288, %s4452_s17  ;;  %s5563_s2 = sld [smem:[#allocation30_spill]] }
  0x23   : > { %s4597_s25 = scalar_select %p104_p5, %s4444_s15, %s106_s20  }
  0x24   : > { %s3738_s26 = smul.u32 768, %s4593_s23  ;;  %p4605_p6 = pnand %p3783_p4, %p115_p3 }
  0x25   : > { %5562 = sst [smem:[#allocation26_spill]] %s4597_s25  ;;  %s5565_s20 = sand.u32 1, %s4456_s18  }
  0x26   : > { %s5564_s19 = scalar_select %p4605_p6, 1, 0 }
  0x27   : > { %s484_s21 = scalar_lea.vmem [#allocation7], %s3738_s26  ;;  %s4613_s25 = scalar_lea.sflag [#allocation8], %s5565_s20 }
  0x28   : > { %s4603_s14 = scalar_lea.hbm %s5563_s2, %s3739_s24  ;;  %s491_s22 = sshll.u32 %s484_s21, 4  ;;  %s4609_s22 = int_to_ptr.vmem [resolvable:$true] %s491_s22 }
  0x29   : > { %s4186_s15 = scalar_lea.hbm %s4603_s14, 12288  ;;  %p4619_p8 = pneg %p4605_p6 }
  0x2a   : > { %p4187_p7 = scmp.ne.s32.totalorder %s4603_s14, %s4186_s15  ;;  %s4191_s26 = scalar_lea.hbm %s5563_s2, 24576 }
  0x2b   : > { %s5566_s24 = scalar_select %p4619_p8, 1, 0 }
  0x2c   : > { %p4189_p9 = pnand %p4619_p8, %p4187_p7  ;;  %p4192_p11 = scmp.lt.u32.totalorder %s4603_s14, %s5563_s2 }
  0x2d   : > { %p4193_p12 = scmp.lt.u32.totalorder %s4191_s26, %s4186_s15  ;;  %p4195_p0 = scmp.lt.u32.totalorder %s4186_s15, %s4603_s14 }
  0x2e   : > { %p4190_p10 = pneg %p4189_p9 }
  0x2f   : > { %p4194_p13 = por %p4193_p12, %p4192_p11 }
  0x31   : > { %p4196_p1 = por %p4195_p0, %p4194_p13 }
  0x33   : > { %p4197_p2 = pnand %p4196_p1, %p4190_p10 }
  0x35   : > { %4200 = shalt.err (!%p4197_p2)
}
  0x36   : > { %s4201_s20 = scalar_lea.vmem %s4609_s22, 12288  ;;  %s4458_s27 = smov [#allocation7]  }
  0x37   : > { %p4202_p3 = scmp.ne.s32.totalorder %s4609_s22, %s4201_s20  ;;  %s4206_s28 = sshll.u32 %s4458_s27, 4  ;;  %s4207_s28 = int_to_ptr.vmem [resolvable:$false] %s4206_s28 }
  0x38   : > { %s4208_s1 = scalar_lea.vmem %s4207_s28, 24576  ;;  %p4209_p7 = scmp.lt.s32.totalorder %s4609_s22, %s4207_s28 }
  0x39   : > { %p4204_p4 = pnand %p4202_p3, %p4619_p8  ;;  %p4210_p9 = scmp.lt.s32.totalorder %s4208_s1, %s4201_s20 }
  0x3b   : > { %p4205_p5 = pneg %p4204_p4  ;;  %p4211_p11 = por %p4210_p9, %p4209_p7 }
  0x3d   : > { %p4212_p12 = pnand %p4211_p11, %p4205_p5 }
  0x3f   : > { %4215 = shalt.err (!%p4212_p12)
}
  0x40   : > { %s4459_s15 = smov 384   ;;  %s4460_s26 = smov 24  }
  0x41   : > { %3769 = dma.hbm_to_vmem [thread:$0]  (!%p4605_p6), %s4603_s14, 12288, %s4609_s22, %s4613_s25, %s4459_s15, %s4459_s15, %s4460_s26  }
  0x42   : > { %s4644_s21 = sshll.u32 %s4593_s23, 8  ;;  %s4647_s27 = sshll.u32 %s4452_s17, 12 }
  0x43   : > { %s5567_s4 = sld [smem:[#allocation32_spill]]  ;;  %s524_s2 = scalar_lea.vmem [#allocation10], %s4644_s21 }
  0x44   : > { %s531_s13 = sshll.u32 %s524_s2, 4  ;;  %s5568_s14 = sand.u32 1, %s4456_s18   ;;  %s4656_s13 = int_to_ptr.vmem [resolvable:$true] %s531_s13 }
  0x45   : > { %s4660_s22 = scalar_lea.sflag [#allocation11], %s5568_s14 }
  0x49   : > { %s4653_s1 = scalar_lea.hbm %s5567_s4, %s4647_s27  ;;  %s4221_s28 = scalar_lea.hbm %s5567_s4, 8192 }
  0x4a   : > { %s4216_s15 = scalar_lea.hbm %s4653_s1, 4096  ;;  %p4222_p1 = scmp.lt.u32.totalorder %s4653_s1, %s5567_s4 }
  0x4b   : > { %p4217_p10 = scmp.ne.s32.totalorder %s4653_s1, %s4216_s15  ;;  %p4223_p2 = scmp.lt.u32.totalorder %s4221_s28, %s4216_s15 }
  0x4c   : > { %p4225_p4 = scmp.lt.u32.totalorder %s4216_s15, %s4653_s1 }
  0x4d   : > { %p4219_p13 = pnand %p4217_p10, %p4619_p8  ;;  %p4224_p3 = por %p4223_p2, %p4222_p1 }
  0x4f   : > { %p4220_p0 = pneg %p4219_p13  ;;  %p4226_p5 = por %p4225_p4, %p4224_p3 }
  0x51   : > { %p4227_p7 = pnand %p4226_p5, %p4220_p0 }
  0x53   : > { %4230 = shalt.err (!%p4227_p7)
}
  0x54   : > { %s4231_s2 = scalar_lea.vmem %s4656_s13, 4096  ;;  %s4461_s14 = smov [#allocation10]  }
  0x55   : > { %p4232_p9 = scmp.ne.s32.totalorder %s4656_s13, %s4231_s2  ;;  %s4236_s26 = sshll.u32 %s4461_s14, 4  ;;  %s4237_s26 = int_to_ptr.vmem [resolvable:$false] %s4236_s26 }
  0x56   : > { %s4238_s11 = scalar_lea.vmem %s4237_s26, 8192  ;;  %p4239_p10 = scmp.lt.s32.totalorder %s4656_s13, %s4237_s26 }
  0x57   : > { %p4234_p11 = pnand %p4232_p9, %p4619_p8  ;;  %p4240_p13 = scmp.lt.s32.totalorder %s4238_s11, %s4231_s2 }
  0x59   : > { %p4235_p12 = pneg %p4234_p11  ;;  %p4241_p1 = por %p4240_p13, %p4239_p10 }
  0x5b   : > { %p4242_p2 = pnand %p4241_p1, %p4235_p12 }
  0x5d   : > { %4245 = shalt.err (!%p4242_p2)
}
  0x5e   : > { %s5526_s12 = smov 128   ;;  %s5528_s15 = smov 8  }
  0x5f   : > { %3775 = dma.hbm_to_vmem [thread:$0]  (!%p4605_p6), %s4653_s1, 4096, %s4656_s13, %s4660_s22, %s5526_s12, %s5526_s12, %s5528_s15  }
  0x60   : > { %s4688_s20 = sadd.s32 4294967295, %s4456_s18   ;;  %p119_p0 = scmp.ne.s32.totalorder %s4440_s30, %s4436_s29 }
  0x61   : > { %p5532_p3 = scmp.eq.s32.totalorder %s4688_s20, 0  ;;  %p3432_p4 = scmp.ge.s32.totalorder %s4456_s18, 1 }
  0x62   : > { %p442_p5 = scmp.lt.s32.totalorder %s4456_s18, 3  ;;  %s4464_s13 = smov [#allocation4]  }
  0x63   : > { %p4697_p7 = por %p5532_p3, %p119_p0  ;;  %s458_s1 = sshll.u32 %s4464_s13, 4  ;;  %s4705_s1 = int_to_ptr.vmem [resolvable:$true] %s458_s1 }
  0x64   : > { %p4701_p9 = pnand %p3432_p4, %p442_p5  ;;  %s3740_s29 = smul.u32 6, %s4593_s23 }
  0x65   : > { %s5569_s28 = scalar_select %p4697_p7, 1, 0 }
  0x66   : > { %s5571_s2 = scalar_select %p4701_p9, 1, 0 }
  0x67   : > { %5570 = sst [smem:[#allocation27_spill]] %s5569_s28  ;;  %p3762_p11 = pneg %p4701_p9 }
  0x68   : > { %s3741_s26 = smul.u32 96, %s4452_s17  ;;  %s5573_s8 = sld [smem:[#allocation36_spill]] }
  0x69   : > { %p4712_p12 = pnand %p3762_p11, %p5532_p3  ;;  %s5574_s3 = sld [smem:[#allocation31_spill]] }
  0x6a   : > { %s5575_s0 = sld [smem:[#allocation28_spill]] }
  0x6b   : > { %p4248_p13 = pneg %p4712_p12 }
  0x6e   : > { %s4721_s15 = scalar_lea.hbm %s5573_s8, %s4647_s27 }
  0x6f   : > { %s4726_s13 = scalar_lea.hbm %s5574_s3, %s3741_s26 }
  0x70   : > { %s4246_s6 = scalar_lea.hbm %s5575_s0, 1024 }
  0x71   : > { %p4247_p10 = scmp.ne.s32.totalorder %s5575_s0, %s4246_s6  ;;  %p4253_p0 = scmp.lt.u32.totalorder %s4246_s6, %s5575_s0 }
  0x73   : > { %p4249_p1 = pnand %p4248_p13, %p4247_p10 }
  0x75   : > { %p4250_p2 = pneg %p4249_p1 }
  0x77   : > { %p4255_p4 = pnand %p4253_p0, %p4250_p2 }
  0x79   : > { %4258 = shalt.err (!%p4255_p4)
}
  0x7a   : > { %s4259_s4 = scalar_lea.vmem %s4705_s1, 1024  ;;  %p4267_p7 = scmp.lt.s32.totalorder %s4705_s1, %s4705_s1 }
  0x7b   : > { %p4260_p5 = scmp.ne.s32.totalorder %s4705_s1, %s4259_s4  ;;  %p4268_p9 = scmp.lt.s32.totalorder %s4259_s4, %s4259_s4 }
  0x7d   : > { %p4262_p11 = pnand %p4260_p5, %p4248_p13  ;;  %p4269_p6 = por %p4268_p9, %p4267_p7 }
  0x7f   : > { %p4263_p3 = pneg %p4262_p11 }
  0x81   : > { %p4270_p8 = pnand %p4269_p6, %p4263_p3 }
  0x83   : > { %4273 = shalt.err (!%p4270_p8)
}
  0x84   : > { %s4465_s5 = smov 256   ;;  %s4466_s6 = smov 16  }
  0x85   : > { %3765 = dma.hbm_to_vmem [thread:$0]  (!%p4712_p12), %s5575_s0, 1024, %s4705_s1, [#allocation5], %s4465_s5, %s4465_s5, %s4466_s6  }
  0x86   : > { %s505_s16 = scalar_lea.vmem [#allocation9], %s3740_s29  ;;  %s566_s26 = scalar_lea.vmem [#allocation12], %s4644_s21 }
  0x87   : > { %s513_s18 = sshll.u32 %s505_s16, 4  ;;  %s573_s12 = sshll.u32 %s566_s26, 4  ;;  %s514_s18 = int_to_ptr.vmem [resolvable:$true] %s513_s18  ;;  %s4750_s12 = int_to_ptr.vmem [resolvable:$true] %s573_s12 }
  0x88   : > { %s4274_s11 = scalar_lea.hbm %s4726_s13, 96  ;;  %p5576_p8 = scmp.ne.s32.totalorder %s5566_s24, 0 }
  0x89   : > { %p4275_p6 = scmp.ne.s32.totalorder %s4726_s13, %s4274_s11  ;;  %s4279_s14 = scalar_lea.hbm %s5574_s3, 192 }
  0x8a   : > { %p4280_p9 = scmp.lt.u32.totalorder %s4726_s13, %s5574_s3  ;;  %p4281_p12 = scmp.lt.u32.totalorder %s4279_s14, %s4274_s11 }
  0x8b   : > { %p4277_p3 = pnand %p4275_p6, %p5576_p8  ;;  %p4283_p13 = scmp.lt.u32.totalorder %s4274_s11, %s4726_s13 }
  0x8c   : > { %p4282_p10 = por %p4281_p12, %p4280_p9 }
  0x8d   : > { %p4278_p7 = pneg %p4277_p3 }
  0x8e   : > { %p4284_p1 = por %p4283_p13, %p4282_p10 }
  0x90   : > { %p4285_p2 = pnand %p4284_p1, %p4278_p7 }
  0x92   : > { %4288 = shalt.err (!%p4285_p2)
}
  0x93   : > { %s4289_s1 = scalar_lea.vmem %s514_s18, 96  ;;  %s4467_s29 = smov [#allocation9]  }
  0x94   : > { %p4290_p0 = scmp.ne.s32.totalorder %s514_s18, %s4289_s1  ;;  %s4294_s5 = sshll.u32 %s4467_s29, 4  ;;  %s4295_s5 = int_to_ptr.vmem [resolvable:$false] %s4294_s5 }
  0x95   : > { %s4296_s17 = scalar_lea.vmem %s4295_s5, 192  ;;  %p4297_p11 = scmp.lt.s32.totalorder %s514_s18, %s4295_s5 }
  0x96   : > { %p4292_p4 = pnand %p4290_p0, %p5576_p8  ;;  %p4298_p6 = scmp.lt.s32.totalorder %s4296_s17, %s4289_s1 }
  0x98   : > { %p4293_p5 = pneg %p4292_p4  ;;  %p4299_p3 = por %p4298_p6, %p4297_p11 }
  0x9a   : > { %p4300_p9 = pnand %p4299_p3, %p4293_p5 }
  0x9c   : > { %4303 = shalt.err (!%p4300_p9)
}
  0x9d   : > { %p5577_p12 = scmp.ne.s32.totalorder %s5564_s19, 0  ;;  %s4304_s28 = scalar_lea.hbm %s4721_s15, 4096 }
  0x9e   : > { %p4305_p7 = scmp.ne.s32.totalorder %s4721_s15, %s4304_s28  ;;  %s4309_s16 = scalar_lea.hbm %s5573_s8, 8192 }
  0x9f   : > { %3772 = dma.hbm_to_vmem [thread:$0]  (!%p5577_p12), %s4726_s13, 96, %s514_s18, %s4613_s25  }
  0xa0   : > { %p4307_p10 = pnand %p4305_p7, %p5576_p8  ;;  %p4310_p1 = scmp.lt.u32.totalorder %s4721_s15, %s5573_s8 }
  0xa1   : > { %p4311_p2 = scmp.lt.u32.totalorder %s4309_s16, %s4304_s28  ;;  %p4313_p4 = scmp.lt.u32.totalorder %s4304_s28, %s4721_s15 }
  0xa2   : > { %p4308_p13 = pneg %p4307_p10 }
  0xa3   : > { %p4312_p0 = por %p4311_p2, %p4310_p1 }
  0xa5   : > { %p4314_p5 = por %p4313_p4, %p4312_p0 }
  0xa7   : > { %p4315_p11 = pnand %p4314_p5, %p4308_p13 }
  0xa9   : > { %4318 = shalt.err (!%p4315_p11)
}
  0xaa   : > { %s4319_s25 = scalar_lea.vmem %s4750_s12, 4096  ;;  %s4468_s13 = smov [#allocation12]  }
  0xab   : > { %p4320_p6 = scmp.ne.s32.totalorder %s4750_s12, %s4319_s25  ;;  %s4324_s18 = sshll.u32 %s4468_s13, 4  ;;  %s4325_s18 = int_to_ptr.vmem [resolvable:$false] %s4324_s18 }
  0xac   : > { %s4326_s4 = scalar_lea.vmem %s4325_s18, 8192  ;;  %p4327_p7 = scmp.lt.s32.totalorder %s4750_s12, %s4325_s18 }
  0xad   : > { %p4322_p3 = pnand %p4320_p6, %p5576_p8  ;;  %p4328_p10 = scmp.lt.s32.totalorder %s4326_s4, %s4319_s25 }
  0xaf   : > { %p4323_p9 = pneg %p4322_p3  ;;  %p4329_p1 = por %p4328_p10, %p4327_p7 }
  0xb1   : > { %p4330_p2 = pnand %p4329_p1, %p4323_p9 }
  0xb3   : > { %4333 = shalt.err (!%p4330_p2)
}
  0xb4   : > { %s5578_s14 = smov 8   ;;  %s5579_s7 = smov 128  }
  0xb5   : > { %3778 = dma.hbm_to_vmem [thread:$0]  (!%p5577_p12), %s4721_s15, 4096, %s4750_s12, %s4660_s22, %s5579_s7, %s5579_s7, %s5578_s14  }
  0xb6   : > { %s5580_s10 = sld [smem:[#allocation38_spill]]  ;;  %s594_s17 = scalar_lea.vmem [#allocation13], %s4644_s21 }
  0xb7   : > { %s601_s28 = sshll.u32 %s594_s17, 4  ;;  %s591_s6 = scalar_lea.sflag [#allocation14], %s4593_s23  ;;  %s4802_s28 = int_to_ptr.vmem [resolvable:$true] %s601_s28 }
  0xbc   : > { %s4799_s5 = scalar_lea.hbm %s5580_s10, %s4647_s27  ;;  %s4339_s12 = scalar_lea.hbm %s5580_s10, 8192 }
  0xbd   : > { %s4334_s9 = scalar_lea.hbm %s4799_s5, 4096  ;;  %p4340_p5 = scmp.lt.u32.totalorder %s4799_s5, %s5580_s10 }
  0xbe   : > { %p4335_p13 = scmp.ne.s32.totalorder %s4799_s5, %s4334_s9  ;;  %p4341_p11 = scmp.lt.u32.totalorder %s4339_s12, %s4334_s9 }
  0xbf   : > { %p4343_p3 = scmp.lt.u32.totalorder %s4334_s9, %s4799_s5 }
  0xc0   : > { %p4337_p0 = pnand %p4335_p13, %p5576_p8  ;;  %p4342_p6 = por %p4341_p11, %p4340_p5 }
  0xc2   : > { %p4338_p4 = pneg %p4337_p0  ;;  %p4344_p9 = por %p4343_p3, %p4342_p6 }
  0xc4   : > { %p4345_p7 = pnand %p4344_p9, %p4338_p4 }
  0xc6   : > { %4348 = shalt.err (!%p4345_p7)
}
  0xc7   : > { %s4349_s21 = scalar_lea.vmem %s4802_s28, 4096  ;;  %s4469_s26 = smov [#allocation13]  }
  0xc8   : > { %p4350_p10 = scmp.ne.s32.totalorder %s4802_s28, %s4349_s21  ;;  %s4354_s11 = sshll.u32 %s4469_s26, 4  ;;  %s4355_s11 = int_to_ptr.vmem [resolvable:$false] %s4354_s11 }
  0xc9   : > { %s4356_s25 = scalar_lea.vmem %s4355_s11, 8192  ;;  %p4357_p13 = scmp.lt.s32.totalorder %s4802_s28, %s4355_s11 }
  0xca   : > { %p4352_p1 = pnand %p4350_p10, %p5576_p8  ;;  %p4358_p0 = scmp.lt.s32.totalorder %s4356_s25, %s4349_s21 }
  0xcc   : > { %p4353_p2 = pneg %p4352_p1  ;;  %p4359_p5 = por %p4358_p0, %p4357_p13 }
  0xce   : > { %p4360_p11 = pnand %p4359_p5, %p4353_p2 }
  0xd0   : > { %4363 = shalt.err (!%p4360_p11)
}
  0xd1   : > { %3781 = dma.hbm_to_vmem [thread:$0]  (!%p5577_p12), %s4799_s5, 4096, %s4802_s28, %s591_s6, %s5579_s7, %s5579_s7, %s5578_s14  }
  0xd2   : > { %p5581_p8 = scmp.ne.s32.totalorder %s5571_s2, 0 }
  0xd3   : > { %p5582_p4 = scmp.eq.s32.totalorder (!%p5581_p8), %s4688_s20, 0 }
  0xd4   : > { %634 = sbr.rel (%p5581_p8) target bundleno = 3191 (0xc77), region = 76 }
  0xdb   : > { %4415 = dma.done.wait (%p5582_p4), [#allocation5], 1024   ;;  %p5583_p6 = pmov %p5582_p4 }
  0xdc   : > { %s5584_s19 = sld [smem:[#allocation27_spill]]  ;;  %s640_s24 = sand.u32 1, %s4688_s20  }
  0xdd   : > { %4417 = vsyncadd (%p5583_p6), [#allocation5], 4294966272  ;;  %s642_s13 = sand.u32 1, %s4440_s30   ;;  %s641_s4 = scalar_lea.sflag [#allocation8], %s640_s24 }
  0xde   : > { %s3742_s18 = smul.u32 768, %s642_s13 }
  0xe0   : > { %s4839_s23 = scalar_lea.vmem [#allocation7], %s3742_s18 }
  0xe2   : > { %p5585_p3 = scmp.ne.s32.totalorder %s5584_s19, 0 }
  0xe4   : > { %4419 = dma.done.wait (%p5585_p3), %s641_s4, 12384  }
  0xe5   : > { %4421 = vsyncadd (%p5585_p3), %s641_s4, 4294954912  ;;  %s3743_s2 = smul.u32 6, %s642_s13  ;;  %s3449_s14 = sshll.u32 %s642_s13, 8 }
  0xe6   : > { %s659_s1 = scalar_lea.sflag [#allocation11], %s640_s24  ;;  %s4847_s29 = scalar_lea.vmem [#allocation10], %s3449_s14 }
  0xe7   : > { %s4845_s7 = scalar_lea.vmem [#allocation9], %s3743_s2 }
  0xe8   : > { %4423 = dma.done.wait (%p5585_p3), %s659_s1, 8192  }
  0xe9   : > { %4425 = vsyncadd (%p5585_p3), %s659_s1, 4294959104  ;;  %s4853_s5 = scalar_lea.vmem [#allocation12], %s3449_s14  ;;  %s677_s17 = scalar_lea.sflag [#allocation14], %s642_s13 }
  0xea   : > { %s4855_s28 = scalar_lea.vmem [#allocation13], %s3449_s14 }
  0xeb   : > { %4427 = dma.done.wait (%p5585_p3), %s677_s17, 4096  }
  0xec   : > { %4429 = vsyncadd (%p5585_p3), %s677_s17, 4294963200  ;;  %s5586_s6 = sld [smem:[#allocation22_spill]]  ;;  %s5588_s11 = sld [smem:[#allocation34_spill]] }
  0xed   : > { %s5589_s13 = sld [smem:[#allocation35_spill]]  ;;  %s5590_s14 = sld [smem:[#allocation37_spill]] }
  0xee   : > { %s5591_s15 = sld [smem:[#allocation39_spill]]  ;;  %s5592_s8 = sld [smem:[#allocation40_spill]] }
  0xef   : > { %s5593_s21 = sld [smem:[#allocation41_spill]] }
  0xf2   : > { %p778_p12 = scmp.lt.s32.totalorder %s5586_s6, 1  ;;  %p3459_p9 = scmp.ne.s32.totalorder %s5586_s6, 0 }
  0xf3   : > { %v812_v0 = vld [vmem:[#allocation4] sm:$0xff] (!%p3459_p9)  ;;  %v813_v1 = vld [vmem:[#allocation4 + $0x8] sm:$0xff] (!%p3459_p9)  ;;  %v814_v2 = vld [vmem:[#allocation4 + $0x10] sm:$0xff] (!%p3459_p9)  ;;  %v828_v3 = vlaneseq (!%p3459_p9)  ;;  %v4470_v14 = vmov (!%p3459_p9), 0.0   ;;  %vm855_vm1 = vcmask (!%p3459_p9), 130048  }
  0xf4   : > { %s779_s9 = scalar_select %p778_p12, %s5586_s6, 1 }
  0xf5   : > { %811 = sbr.rel (%p3459_p9) target bundleno = 261 (0x105), region = 104  ;;  %820 = vst [vmem:[#allocation2] sm:$0xff] (!%p3459_p9), %v812_v0  ;;  %821 = vst [vmem:[#allocation2 + $0x8] sm:$0xff] (!%p3459_p9), %v813_v1  ;;  %v815_v4 = vld [vmem:[#allocation4 + $0x18] sm:$0xff] (!%p3459_p9)  ;;  %v816_v5 = vld [vmem:[#allocation4 + $0x20] sm:$0xff] (!%p3459_p9)  ;;  %v829_v9 = vshrl.u32 (!%p3459_p9), %v828_v3, 7 }
  0xf6   : > { %s4863_s22 = sshll.u32 %s779_s9, 1  ;;  %822 = vst [vmem:[#allocation2 + $0x10] sm:$0xff] (!%p3459_p9), %v814_v2  ;;  %v817_v6 = vld [vmem:[#allocation4 + $0x28] sm:$0xff] (!%p3459_p9)  ;;  %823 = vst [vmem:[#allocation2 + $0x18] sm:$0xff] (!%p3459_p9), %v815_v4  ;;  %v818_v7 = vld [vmem:[#allocation4 + $0x30] sm:$0xff] (!%p3459_p9)  ;;  %v832_v10 = vand.u32 (!%p3459_p9), 127, %v828_v3 }
  0xf7   : > { %s785_s25 = scalar_lea.vmem %s5588_s11, %s4863_s22  ;;  %s789_s18 = scalar_lea.vmem %s5589_s13, %s4863_s22  ;;  %824 = vst [vmem:[#allocation2 + $0x20] sm:$0xff] (!%p3459_p9), %v816_v5  ;;  %825 = vst [vmem:[#allocation2 + $0x28] sm:$0xff] (!%p3459_p9), %v817_v6  ;;  %v819_v8 = vld [vmem:[#allocation4 + $0x38] sm:$0xff] (!%p3459_p9)  ;;  %v830_v13 = vadd.s32 (!%p3459_p9), 8, %v829_v9 }
  0xf8   : > { %s793_s1 = scalar_lea.vmem %s5590_s14, %s4863_s22  ;;  %s797_s12 = scalar_lea.vmem %s5591_s15, %s4863_s22  ;;  %826 = vst [vmem:[#allocation2 + $0x30] sm:$0xff] (!%p3459_p9), %v818_v7  ;;  %827 = vst [vmem:[#allocation2 + $0x38] sm:$0xff] (!%p3459_p9), %v819_v8  ;;  %vm833_vm0 = vcmp.gt.s32.totalorder (!%p3459_p9), %v832_v10, %v829_v9 }
  0xf9   : > { %s801_s27 = scalar_lea.vmem %s5592_s8, %s4863_s22  ;;  %s805_s26 = scalar_lea.vmem %s5593_s21, %s4863_s22  ;;  %v835_v15 = vsel (!%p3459_p9), %vm833_vm0, -1e+30, %v4470_v14  ;;  %vm834_vm2 = vcmp.gt.s32.totalorder (!%p3459_p9), %v832_v10, %v830_v13 }
  0xfa   : > { %s5594_s8 = sld [smem:[#allocation29_spill]] (!%p3459_p9)  ;;  %v836_v18 = vsel (!%p3459_p9), %vm834_vm2, -1e+30, %v4470_v14 }
 0x100   : > { %v3460_v11 = vld [vmem:[%s5594_s8] ss:$0 sm:$0xff]  ;;  %v3461_v12 = vld [vmem:[%s5594_s8 + $0x1] ss:$0 sm:$0xff] }
 0x101   : > { %v851_v16 = vadd.f32 %v3460_v11, %v835_v15  ;;  %v853_v17 = vadd.f32 %v3461_v12, %v835_v15  ;;  %v852_v19 = vadd.f32 %v3460_v11, %v836_v18  ;;  %v854_v20 = vadd.f32 %v3461_v12, %v836_v18 }
 0x103   : > { %856 = vst.msk [vmem:[#allocation3] sm:$0xff] %vm855_vm1, %v851_v16  ;;  %858 = vst.msk [vmem:[#allocation3 + $0x10] sm:$0xff] %vm855_vm1, %v853_v17 }
 0x104   : > { %857 = vst.msk [vmem:[#allocation3 + $0x8] sm:$0xff] %vm855_vm1, %v852_v19  ;;  %859 = vst.msk [vmem:[#allocation3 + $0x18] sm:$0xff] %vm855_vm1, %v854_v20 }
 0x105 PF: > { %v3848_v21 = vld [vmem:[%s4839_s23 + $0xc] ss:$24 sps:$4 sm:$0xff]   ;;  %v3850_v22 = vld [vmem:[%s4839_s23 + $0x8] ss:$24 sps:$4 sm:$0xff]   ;;  %v3851_v23 = vld [vmem:[%s4839_s23 + $0x3c] ss:$24 sps:$4 sm:$0xff]  }
 0x106   : > { %1533 = vmatprep.subr.bf16.mxu1 %v3848_v21  ;;  %v3853_v24 = vld [vmem:[%s4839_s23 + $0x38] ss:$24 sps:$4 sm:$0xff]   ;;  %v3854_v25 = vld [vmem:[%s4839_s23 + $0x4] ss:$24 sps:$4 sm:$0xff]   ;;  %v3860_v28 = vld [vmem:[%s4839_s23 + $0x34] ss:$24 sps:$4 sm:$0xff]  }
 0x107   : > { %1534 = vmatpush1.bf16.msra.mxu1 %v3850_v22  ;;  %v3856_v26 = vld [vmem:[%s4839_s23] ss:$24 sps:$4 sm:$0xff]   ;;  %v3857_v27 = vld [vmem:[%s4839_s23 + $0x6c] ss:$24 sps:$4 sm:$0xff]   ;;  %1480 = vmatprep.subr.bf16.mxu0 %v3854_v25  ;;  %v3862_v29 = vld [vmem:[%s4839_s23 + $0x30] ss:$24 sps:$4 sm:$0xff]  }
 0x108   : > { %1535 = vmatprep.subr.bf16.mxu1 %v3851_v23  ;;  %1481 = vmatpush1.bf16.msra.mxu0 %v3856_v26  ;;  %v3859_v30 = vld [vmem:[%s4839_s23 + $0x68] ss:$24 sps:$4 sm:$0xff]   ;;  %v3863_v31 = vld [vmem:[%s4839_s23 + $0x9c] ss:$24 sps:$4 sm:$0xff]   ;;  %v3865_v34 = vld [vmem:[%s4839_s23 + $0x98] ss:$24 sps:$4 sm:$0xff]  }
 0x109   : > { %1482 = vmatprep.subr.bf16.mxu0 %v3860_v28  ;;  %v3866_v32 = vld [vmem:[%s4839_s23 + $0x64] ss:$24 sps:$4 sm:$0xff]   ;;  %v3868_v33 = vld [vmem:[%s4839_s23 + $0x60] ss:$24 sps:$4 sm:$0xff]   ;;  %v3872_v35 = vld [vmem:[%s4839_s23 + $0x94] ss:$24 sps:$4 sm:$0xff]  }
 0x10a   : > { %v3869_v36 = vld [vmem:[%s4839_s23 + $0xcc] ss:$24 sps:$4 sm:$0xff]   ;;  %v3874_v37 = vld [vmem:[%s4839_s23 + $0x90] ss:$24 sps:$4 sm:$0xff]   ;;  %v3875_v40 = vld [vmem:[%s4839_s23 + $0xfc] ss:$24 sps:$4 sm:$0xff]  }
 0x10b   : > { %1536 = vmatpush1.bf16.msra.mxu1 %v3853_v24  ;;  %v3871_v38 = vld [vmem:[%s4839_s23 + $0xc8] ss:$24 sps:$4 sm:$0xff]   ;;  %v3878_v39 = vld [vmem:[%s4839_s23 + $0xc4] ss:$24 sps:$4 sm:$0xff]   ;;  %v3877_v42 = vld [vmem:[%s4839_s23 + $0xf8] ss:$24 sps:$4 sm:$0xff]  }
 0x10c   : > { %1537 = vmatprep.subr.bf16.mxu1 %v3857_v27  ;;  %1483 = vmatpush1.bf16.msra.mxu0 %v3862_v29  ;;  %v3880_v41 = vld [vmem:[%s4839_s23 + $0xc0] ss:$24 sps:$4 sm:$0xff]   ;;  %v3884_v43 = vld [vmem:[%s4839_s23 + $0xf4] ss:$24 sps:$4 sm:$0xff]   ;;  %v3886_v45 = vld [vmem:[%s4839_s23 + $0xf0] ss:$24 sps:$4 sm:$0xff]  }
 0x10d   : > { %1484 = vmatprep.subr.bf16.mxu0 %v3866_v32  ;;  %v3881_v44 = vld [vmem:[%s4839_s23 + $0x12c] ss:$24 sps:$4 sm:$0xff]   ;;  %v3883_v46 = vld [vmem:[%s4839_s23 + $0x128] ss:$24 sps:$4 sm:$0xff]   ;;  %v3887_v48 = vld [vmem:[%s4839_s23 + $0x15c] ss:$24 sps:$4 sm:$0xff]  }
 0x10e   : > { %v3890_v47 = vld [vmem:[%s4839_s23 + $0x124] ss:$24 sps:$4 sm:$0xff]   ;;  %v3892_v49 = vld [vmem:[%s4839_s23 + $0x120] ss:$24 sps:$4 sm:$0xff]   ;;  %v3896_v51 = vld [vmem:[%s4839_s23 + $0x154] ss:$24 sps:$4 sm:$0xff]  }
 0x10f   : > { %1538 = vmatpush1.bf16.msra.mxu1 %v3859_v30  ;;  %v3889_v50 = vld [vmem:[%s4839_s23 + $0x158] ss:$24 sps:$4 sm:$0xff]   ;;  %v3893_v52 = vld [vmem:[%s4839_s23 + $0x18c] ss:$24 sps:$4 sm:$0xff]   ;;  %v3895_v54 = vld [vmem:[%s4839_s23 + $0x188] ss:$24 sps:$4 sm:$0xff]  }
 0x110   : > { %1539 = vmatprep.subr.bf16.mxu1 %v3863_v31  ;;  %1485 = vmatpush1.bf16.msra.mxu0 %v3868_v33  ;;  %v3898_v53 = vld [vmem:[%s4839_s23 + $0x150] ss:$24 sps:$4 sm:$0xff]   ;;  %v3902_v55 = vld [vmem:[%s4839_s23 + $0x184] ss:$24 sps:$4 sm:$0xff]   ;;  %v3904_v57 = vld [vmem:[%s4839_s23 + $0x180] ss:$24 sps:$4 sm:$0xff]  }
 0x111   : > { %1486 = vmatprep.subr.bf16.mxu0 %v3872_v35  ;;  %v3899_v56 = vld [vmem:[%s4839_s23 + $0x1bc] ss:$24 sps:$4 sm:$0xff]   ;;  %v3901_v58 = vld [vmem:[%s4839_s23 + $0x1b8] ss:$24 sps:$4 sm:$0xff]   ;;  %v3905_v60 = vld [vmem:[%s4839_s23 + $0x1ec] ss:$24 sps:$4 sm:$0xff]  }
 0x112   : > { %v3908_v59 = vld [vmem:[%s4839_s23 + $0x1b4] ss:$24 sps:$4 sm:$0xff]   ;;  %v3910_v61 = vld [vmem:[%s4839_s23 + $0x1b0] ss:$24 sps:$4 sm:$0xff]   ;;  %v3914_v63 = vld [vmem:[%s4839_s23 + $0x1e4] ss:$24 sps:$4 sm:$0xff]  }
 0x113   : > { %1540 = vmatpush1.bf16.msra.mxu1 %v3865_v34  ;;  %v3907_v62 = vld [vmem:[%s4839_s23 + $0x1e8] ss:$24 sps:$4 sm:$0xff]   ;;  %v3911_v0 = vld [vmem:[%s4839_s23 + $0x21c] ss:$24 sps:$4 sm:$0xff]   ;;  %v3913_v3 = vld [vmem:[%s4839_s23 + $0x218] ss:$24 sps:$4 sm:$0xff]   ;;  %v970_v34 = vlaneseq }
 0x114   : > { %1541 = vmatprep.subr.bf16.mxu1 %v3869_v36  ;;  %1487 = vmatpush1.bf16.msra.mxu0 %v3874_v37  ;;  %v861_v1 = vld [vmem:[#allocation2 + $0x8] sm:$0xff]  ;;  %v863_v2 = vld [vmem:[#allocation2 + $0x18] sm:$0xff]  ;;  %v4962_v22 = vld [vmem:[#allocation2] sm:$0xff]  ;;  %v4471_v33 = vmov 0.0   ;;  %vm4472_vm3 = vmmov 0   ;;  %vm1737_vm4 = vcmask 130048  }
 0x115   : > { %1488 = vmatprep.subr.bf16.mxu0 %v3878_v39  ;;  %v3916_v4 = vld [vmem:[%s4839_s23 + $0x1e0] ss:$24 sps:$4 sm:$0xff]   ;;  %v869_v5 = vpack.c.bf16 %v863_v2, %v861_v1  ;;  %v3917_v6 = vld [vmem:[%s4839_s23 + $0x24c] ss:$24 sps:$4 sm:$0xff]   ;;  %v3922_v8 = vld [vmem:[%s4839_s23 + $0x210] ss:$24 sps:$4 sm:$0xff]  }
 0x116   : > { %v3920_v7 = vld [vmem:[%s4839_s23 + $0x214] ss:$24 sps:$4 sm:$0xff]   ;;  %v3919_v9 = vld [vmem:[%s4839_s23 + $0x248] ss:$24 sps:$4 sm:$0xff]   ;;  %v3926_v10 = vld [vmem:[%s4839_s23 + $0x244] ss:$24 sps:$4 sm:$0xff]  }
 0x117   : > { %1542 = vmatpush1.bf16.msra.mxu1 %v3871_v38  ;;  %1565 = vmatprep.mubr.bf16.mxu1 %v869_v5  ;;  %v3923_v11 = vld [vmem:[%s4839_s23 + $0x27c] ss:$24 sps:$4 sm:$0xff]   ;;  %v3928_v12 = vld [vmem:[%s4839_s23 + $0x240] ss:$24 sps:$4 sm:$0xff]   ;;  %v3929_v15 = vld [vmem:[%s4839_s23 + $0x2ac] ss:$24 sps:$4 sm:$0xff]  }
 0x118   : > { %1543 = vmatprep.subr.bf16.mxu1 %v3875_v40  ;;  %1489 = vmatpush1.bf16.msra.mxu0 %v3880_v41  ;;  %v3925_v13 = vld [vmem:[%s4839_s23 + $0x278] ss:$24 sps:$4 sm:$0xff]   ;;  %v3932_v14 = vld [vmem:[%s4839_s23 + $0x274] ss:$24 sps:$4 sm:$0xff]   ;;  %v3931_v17 = vld [vmem:[%s4839_s23 + $0x2a8] ss:$24 sps:$4 sm:$0xff]  }
 0x119   : > { %1490 = vmatprep.subr.bf16.mxu0 %v3884_v43  ;;  %1512 = vmatprep.mubr.bf16.mxu0 %v869_v5  ;;  %v3934_v16 = vld [vmem:[%s4839_s23 + $0x270] ss:$24 sps:$4 sm:$0xff]   ;;  %v3938_v18 = vld [vmem:[%s4839_s23 + $0x2a4] ss:$24 sps:$4 sm:$0xff]   ;;  %v3940_v20 = vld [vmem:[%s4839_s23 + $0x2a0] ss:$24 sps:$4 sm:$0xff]  }
 0x11a   : > { %v3935_v19 = vld [vmem:[%s4839_s23 + $0x2dc] ss:$24 sps:$4 sm:$0xff]   ;;  %v3937_v21 = vld [vmem:[%s4839_s23 + $0x2d8] ss:$24 sps:$4 sm:$0xff]   ;;  %v4974_v27 = vld [vmem:[#allocation2 + $0x28] sm:$0xff]  ;;  %v4997_v35 = vshrl.u32 %v970_v34, 7 }
 0x11b   : > { %1544 = vmatpush1.bf16.msra.mxu1 %v3877_v42  ;;  %v4964_v23 = vld [vmem:[#allocation2 + $0x10] sm:$0xff]  ;;  %v4976_v28 = vld [vmem:[#allocation2 + $0x38] sm:$0xff]  ;;  %v4982_v30 = vld [vmem:[#allocation2 + $0x20] sm:$0xff] }
 0x11c   : > { %1545 = vmatprep.subr.bf16.mxu1 %v3881_v44  ;;  %1491 = vmatpush1.bf16.msra.mxu0 %v3886_v45  ;;  %v3941_v24 = vld [vmem:[%s4839_s23 + $0x2d4] ss:$24 sps:$4 sm:$0xff]   ;;  %v3943_v25 = vld [vmem:[%s4839_s23 + $0x2d0] ss:$24 sps:$4 sm:$0xff]   ;;  %v4970_v26 = vpack.c.bf16 %v4964_v23, %v4962_v22  ;;  %v4980_v29 = vpack.c.bf16 %v4976_v28, %v4974_v27  ;;  %v980_v36 = vsub.s32 2, %v4997_v35  ;;  %v984_v38 = vsub.s32 3, %v4997_v35 }
 0x11d   : > { %1492 = vmatprep.subr.bf16.mxu0 %v3890_v47  ;;  %v4984_v31 = vld [vmem:[#allocation2 + $0x30] sm:$0xff]  ;;  %v5001_v37 = vld [vmem:[%s4845_s7] sm:$0x3f]  ;;  %v5005_v39 = vsub.s32 0, %v4997_v35  ;;  %v5008_v40 = vsub.s32 1, %v4997_v35 }
 0x11e   : > { %v4988_v32 = vpack.c.bf16 %v4984_v31, %v4982_v30  ;;  %v981_v41 = vrot.slane %v5001_v37, %v980_v36  ;;  %v985_v43 = vrot.slane %v5001_v37, %v984_v38  ;;  %v3962_v34 = vld [vmem:[%s4839_s23 + $0x130] ss:$24 sps:$4 sm:$0xff]   ;;  %v3967_v36 = vld [vmem:[%s4839_s23 + $0x164] ss:$24 sps:$4 sm:$0xff]   ;;  %v3965_v38 = vld [vmem:[%s4839_s23 + $0x160] ss:$24 sps:$4 sm:$0xff]  }
 0x11f   : > { %1546 = vmatpush1.bf16.msra.mxu1 %v3883_v46  ;;  %v5014_v44 = vrot.slane %v5001_v37, %v5005_v39  ;;  %v5018_v46 = vrot.slane %v5001_v37, %v5008_v40 }
 0x120   : > { %1547 = vmatprep.subr.bf16.mxu1 %v3887_v48  ;;  %1493 = vmatpush1.bf16.msra.mxu0 %v3892_v49 }
 0x121   : > { %1494 = vmatprep.subr.bf16.mxu0 %v3896_v51 }
 0x123   : > { %1548 = vmatpush1.bf16.msra.mxu1 %v3889_v50 }
 0x124   : > { %1549 = vmatprep.subr.bf16.mxu1 %v3893_v52  ;;  %1495 = vmatpush1.bf16.msra.mxu0 %v3898_v53 }
 0x125   : > { %1496 = vmatprep.subr.bf16.mxu0 %v3902_v55 }
 0x127   : > { %1550 = vmatpush1.bf16.msra.mxu1 %v3895_v54 }
 0x128   : > { %1551 = vmatprep.subr.bf16.mxu1 %v3899_v56  ;;  %1497 = vmatpush1.bf16.msra.mxu0 %v3904_v57 }
 0x129   : > { %1498 = vmatprep.subr.bf16.mxu0 %v3908_v59 }
 0x12b   : > { %1552 = vmatpush1.bf16.msra.mxu1 %v3901_v58 }
 0x12c   : > { %1553 = vmatprep.subr.bf16.mxu1 %v3905_v60  ;;  %1499 = vmatpush1.bf16.msra.mxu0 %v3910_v61 }
 0x12d   : > { %1500 = vmatprep.subr.bf16.mxu0 %v3914_v63 }
 0x12f   : > { %1554 = vmatpush1.bf16.msra.mxu1 %v3907_v62 }
 0x130   : > { %1555 = vmatprep.subr.bf16.mxu1 %v3911_v0  ;;  %1501 = vmatpush1.bf16.msra.mxu0 %v3916_v4 }
 0x131   : > { %1502 = vmatprep.subr.bf16.mxu0 %v3920_v7 }
 0x133   : > { %1556 = vmatpush1.bf16.msra.mxu1 %v3913_v3 }
 0x134   : > { %1557 = vmatprep.subr.bf16.mxu1 %v3917_v6  ;;  %1503 = vmatpush1.bf16.msra.mxu0 %v3922_v8 }
 0x135   : > { %1504 = vmatprep.subr.bf16.mxu0 %v3926_v10 }
 0x137   : > { %1558 = vmatpush1.bf16.msra.mxu1 %v3919_v9 }
 0x138   : > { %1559 = vmatprep.subr.bf16.mxu1 %v3923_v11  ;;  %1505 = vmatpush1.bf16.msra.mxu0 %v3928_v12  ;;  %v3944_v11 = vld [vmem:[%s4839_s23 + $0x10] ss:$24 sps:$4 sm:$0xff]   ;;  %v3946_v12 = vld [vmem:[%s4839_s23 + $0x14] ss:$24 sps:$4 sm:$0xff]  }
 0x139   : > { %1506 = vmatprep.subr.bf16.mxu0 %v3932_v14  ;;  %v3947_v14 = vld [vmem:[%s4839_s23 + $0x40] ss:$24 sps:$4 sm:$0xff]  }
 0x13b   : > { %1560 = vmatpush1.bf16.msra.mxu1 %v3925_v13  ;;  %v3949_v13 = vld [vmem:[%s4839_s23 + $0x44] ss:$24 sps:$4 sm:$0xff]  }
 0x13c   : > { %1561 = vmatprep.subr.bf16.mxu1 %v3929_v15  ;;  %1507 = vmatpush1.bf16.msra.mxu0 %v3934_v16  ;;  %v3952_v15 = vld [vmem:[%s4839_s23 + $0x74] ss:$24 sps:$4 sm:$0xff]   ;;  %v3950_v16 = vld [vmem:[%s4839_s23 + $0x70] ss:$24 sps:$4 sm:$0xff]  }
 0x13d   : > { %1508 = vmatprep.subr.bf16.mxu0 %v3938_v18  ;;  %v3953_v18 = vld [vmem:[%s4839_s23 + $0xa0] ss:$24 sps:$4 sm:$0xff]  }
 0x13f   : > { %1562 = vmatpush1.bf16.msra.mxu1 %v3931_v17  ;;  %v3955_v17 = vld [vmem:[%s4839_s23 + $0xa4] ss:$24 sps:$4 sm:$0xff]  }
 0x140   : > { %1563 = vmatprep.subr.bf16.mxu1 %v3935_v19  ;;  %1509 = vmatpush1.bf16.msra.mxu0 %v3940_v20  ;;  %v3958_v19 = vld [vmem:[%s4839_s23 + $0xd4] ss:$24 sps:$4 sm:$0xff]   ;;  %v3956_v20 = vld [vmem:[%s4839_s23 + $0xd0] ss:$24 sps:$4 sm:$0xff]  }
 0x141   : > { %1510 = vmatprep.subr.bf16.mxu0 %v3941_v24  ;;  %v3959_v24 = vld [vmem:[%s4839_s23 + $0x100] ss:$24 sps:$4 sm:$0xff]  }
 0x143   : > { %1564 = vmatpush1.bf16.msra.mxu1 %v3937_v21  ;;  %v3961_v21 = vld [vmem:[%s4839_s23 + $0x104] ss:$24 sps:$4 sm:$0xff]  }
 0x144   : > { %1511 = vmatpush1.bf16.msra.mxu0 %v3943_v25  ;;  %3690 = vmatprep.subr.bf16.mxu1 %v4471_v33  ;;  %v3964_v25 = vld [vmem:[%s4839_s23 + $0x134] ss:$24 sps:$4 sm:$0xff]  }
 0x145   : > { %1586 = vmatprep.subr.bf16.mxu0 %v3946_v12 }
 0x146   : > { %1566 = vmatmul.mubr.bf16.vlgmr.msra.gmra.mrb[0].mxu1 %v4970_v26 }
 0x147   : > { %1513 = vmatmul.mubr.bf16.vlgmr.msra.gmra.mrb[0].mxu0 %v4970_v26  ;;  %1575 = vmatprep.mubr.bf16.mxu1 %v4980_v29 }
 0x148   : > { %1522 = vmatprep.mubr.bf16.mxu0 %v4980_v29  ;;  %1587 = vmatpush1.bf16.msra.mxu0 %v3944_v11 }
 0x149   : > { %1588 = vmatprep.subr.bf16.mxu0 %v3949_v13 }
 0x14c   : > { %1589 = vmatpush1.bf16.msra.mxu0 %v3947_v14 }
 0x14d   : > { %1590 = vmatprep.subr.bf16.mxu0 %v3952_v15 }
 0x14e   : > { %1576 = vmatmul.mubr.bf16.gmra.mrb[4].mxu1 %v4988_v32 }
 0x14f   : > { %1523 = vmatmul.mubr.bf16.gmra.mrb[4].mxu0 %v4988_v32  ;;  %3692 = vmatprep.mubr.msk.bf16.mxu1 %vm4472_vm3, %v4471_v33 }
 0x150   : > { %1618 = vmatprep.mubr.bf16.mxu0 %v869_v5  ;;  %1591 = vmatpush1.bf16.msra.mxu0 %v3950_v16 }
 0x151   : > { %1592 = vmatprep.subr.bf16.mxu0 %v3955_v17 }
 0x154   : > { %1593 = vmatpush1.bf16.msra.mxu0 %v3953_v18 }
 0x155   : > { %1594 = vmatprep.subr.bf16.mxu0 %v3958_v19 }
 0x158   : > { %1595 = vmatpush1.bf16.msra.mxu0 %v3956_v20 }
 0x159   : > { %1596 = vmatprep.subr.bf16.mxu0 %v3961_v21 }
 0x15c   : > { %1597 = vmatpush1.bf16.msra.mxu0 %v3959_v24 }
 0x15d   : > { %1598 = vmatprep.subr.bf16.mxu0 %v3964_v25 }
 0x160   : > { %1599 = vmatpush1.bf16.msra.mxu0 %v3962_v34 }
 0x161   : > { %1600 = vmatprep.subr.bf16.mxu0 %v3967_v36 }
 0x164   : > { %1601 = vmatpush1.bf16.msra.mxu0 %v3965_v38 }
 0x219   : > { %v1567_v42 = vpop.f32.mrb[0].mxu1 }
 0x21a   : > { %v1569_v45 = vpop.f32.mrb[1].mxu1  ;;  %v1568_v48 = vadd.f32 %v1567_v42, %v981_v41  ;;  %v1514_v51 = vpop.f32.mrb[0].mxu0  ;;  %v3968_v42 = vld [vmem:[%s4839_s23 + $0x190] ss:$24 sps:$4 sm:$0xff]  }
 0x21b   : > { %v1571_v47 = vpop.f32.mrb[2].mxu1  ;;  %v1570_v52 = vadd.f32 %v1569_v45, %v985_v43  ;;  %v1515_v54 = vadd.f32 %v1514_v51, %v5014_v44  ;;  %v1516_v55 = vpop.f32.mrb[1].mxu0  ;;  %v3971_v45 = vld [vmem:[%s4839_s23 + $0x1c0] ss:$24 sps:$4 sm:$0xff]   ;;  %v3982_v51 = vld [vmem:[%s4839_s23 + $0x254] ss:$24 sps:$4 sm:$0xff]  }
 0x21c   : > { %v1572_v49 = vadd.f32 %v1571_v47, %v981_v41  ;;  %v1573_v50 = vpop.f32.mrb[3].mxu1  ;;  %v1517_v57 = vadd.f32 %v1516_v55, %v5018_v46  ;;  %v1518_v58 = vpop.f32.mrb[2].mxu0  ;;  %v3976_v47 = vld [vmem:[%s4839_s23 + $0x1f4] ss:$24 sps:$4 sm:$0xff]  }
 0x21d   : > { %v1574_v53 = vadd.f32 %v1573_v50, %v985_v43  ;;  %v1519_v60 = vadd.f32 %v1518_v58, %v5014_v44  ;;  %v1520_v61 = vpop.f32.mrb[3].mxu0  ;;  %v3977_v50 = vld [vmem:[%s4839_s23 + $0x220] ss:$24 sps:$4 sm:$0xff]   ;;  %v3988_v55 = vld [vmem:[%s4839_s23 + $0x2b4] ss:$24 sps:$4 sm:$0xff]  }
 0x21e   : > { %v1641_v56 = vpack.c.bf16 %v1572_v49, %v1568_v48  ;;  %v1521_v62 = vadd.f32 %v1520_v61, %v5018_v46  ;;  %v3974_v48 = vld [vmem:[%s4839_s23 + $0x1f0] ss:$24 sps:$4 sm:$0xff]   ;;  %v3979_v49 = vld [vmem:[%s4839_s23 + $0x224] ss:$24 sps:$4 sm:$0xff]   ;;  %v3989_v58 = vld [vmem:[%s4839_s23 + $0x2e0] ss:$24 sps:$4 sm:$0xff]  }
 0x21f   : > { %v1642_v59 = vpack.c.bf16 %v1574_v53, %v1570_v52  ;;  %v1639_v63 = vpack.c.bf16 %v1519_v60, %v1515_v54  ;;  %v3980_v52 = vld [vmem:[%s4839_s23 + $0x250] ss:$24 sps:$4 sm:$0xff]   ;;  %v3985_v53 = vld [vmem:[%s4839_s23 + $0x284] ss:$24 sps:$4 sm:$0xff]   ;;  %v3983_v54 = vld [vmem:[%s4839_s23 + $0x280] ss:$24 sps:$4 sm:$0xff]  }
 0x220   : > { %3691 = vmatpush3.bf16.xpose.msra.mxu1 %v1641_v56  ;;  %v1640_v0 = vpack.c.bf16 %v1521_v62, %v1517_v57  ;;  %v3986_v56 = vld [vmem:[%s4839_s23 + $0x2b0] ss:$24 sps:$4 sm:$0xff]   ;;  %v3991_v57 = vld [vmem:[%s4839_s23 + $0x2e4] ss:$24 sps:$4 sm:$0xff]  }
 0x221   : > { %3696 = vmatprep.subr.bf16.mxu1 %v4471_v33  ;;  %v1577_v1 = vpop.f32.mrb[4].mxu1  ;;  %v1731_v60 = vld [vmem:[#allocation3] sm:$0xff] }
 0x222   : > { %v5030_v2 = vadd.f32 %v1577_v1, %v981_v41  ;;  %v1579_v3 = vpop.f32.mrb[5].mxu1 }
 0x223   : > { %v5032_v4 = vadd.f32 %v1579_v3, %v985_v43  ;;  %v1581_v5 = vpop.f32.mrb[6].mxu1 }
 0x224   : > { %v5034_v6 = vadd.f32 %v1581_v5, %v981_v41  ;;  %v1583_v7 = vpop.f32.mrb[7].mxu1  ;;  %v3970_v41 = vld [vmem:[%s4839_s23 + $0x194] ss:$24 sps:$4 sm:$0xff]  }
 0x225   : > { %v5036_v8 = vadd.f32 %v1583_v7, %v985_v43  ;;  %1602 = vmatprep.subr.bf16.mxu0 %v3970_v41  ;;  %v3973_v43 = vld [vmem:[%s4839_s23 + $0x1c4] ss:$24 sps:$4 sm:$0xff]  }
 0x226   : > { %v1874_v9 = vpack.c.bf16 %v5034_v6, %v5030_v2  ;;  %1603 = vmatpush1.bf16.msra.mxu0 %v3968_v42  ;;  %v4033_v2 = vld [vmem:[%s4847_s29 + $0xd4] ss:$8 sps:$4 sm:$0xff]   ;;  %v4031_v6 = vld [vmem:[%s4847_s29 + $0xd0] ss:$8 sps:$4 sm:$0xff]  }
 0x227   : > { %3693 = vmatmul.mubr.bf16.vlgmr.msra.gmra.mrb[8].mxu1 %v1639_v63  ;;  %v1875_v10 = vpack.c.bf16 %v5036_v8, %v5032_v4  ;;  %1604 = vmatprep.subr.bf16.mxu0 %v3973_v43  ;;  %v4039_v4 = vld [vmem:[%s4847_s29 + $0xf4] ss:$8 sps:$4 sm:$0xff]   ;;  %v4037_v8 = vld [vmem:[%s4847_s29 + $0xf0] ss:$8 sps:$4 sm:$0xff]  }
 0x228   : > { %3697 = vmatpush3.bf16.xpose.msra.mxu1 %v1642_v59  ;;  %3698 = vmatprep.mubr.msk.bf16.mxu1 %vm4472_vm3, %v4471_v33 }
 0x229   : > { %3702 = vmatprep.subr.bf16.mxu1 %v4471_v33 }
 0x22a   : > { %1605 = vmatpush1.bf16.msra.mxu0 %v3971_v45 }
 0x22b   : > { %1606 = vmatprep.subr.bf16.mxu0 %v3976_v47 }
 0x22e   : > { %1607 = vmatpush1.bf16.msra.mxu0 %v3974_v48 }
 0x22f   : > { %3699 = vmatmul.mubr.bf16.vlgmr.msra.gmra.mrb[12].mxu1 %v1640_v0  ;;  %1608 = vmatprep.subr.bf16.mxu0 %v3979_v49  ;;  %v1732_v0 = vld [vmem:[#allocation3 + $0x8] sm:$0xff] }
 0x230   : > { %3704 = vmatprep.mubr.msk.bf16.mxu1 %vm4472_vm3, %v4471_v33 }
 0x232   : > { %1609 = vmatpush1.bf16.msra.mxu0 %v3977_v50 }
 0x233   : > { %1610 = vmatprep.subr.bf16.mxu0 %v3982_v51 }
 0x236   : > { %1611 = vmatpush1.bf16.msra.mxu0 %v3980_v52 }
 0x237   : > { %1612 = vmatprep.subr.bf16.mxu0 %v3985_v53 }
 0x23a   : > { %1613 = vmatpush1.bf16.msra.mxu0 %v3983_v54 }
 0x23b   : > { %1614 = vmatprep.subr.bf16.mxu0 %v3988_v55 }
 0x23e   : > { %1615 = vmatpush1.bf16.msra.mxu0 %v3986_v56  ;;  %v1524_v56 = vpop.f32.mrb[4].mxu0 }
 0x23f   : > { %1616 = vmatprep.subr.bf16.mxu0 %v3991_v57  ;;  %v1526_v57 = vpop.f32.mrb[5].mxu0 }
 0x242   : > { %1617 = vmatpush1.bf16.msra.mxu0 %v3989_v58  ;;  %v1528_v58 = vpop.f32.mrb[6].mxu0 }
 0x245   : > { %1619 = vmatmul.mubr.bf16.vlgmr.msra.gmra.mrb[8].mxu0 %v4970_v26 }
 0x246   : > { %1628 = vmatprep.mubr.bf16.mxu0 %v4980_v29 }
 0x24d   : > { %1629 = vmatmul.mubr.bf16.gmra.mrb[12].mxu0 %v4988_v32 }
 0x2fa   : > { %v1679_v59 = vpop.f32.mrb[8].mxu1 }
 0x2fb   : > { %v1727_v61 = vmul.f32 0.088388346, %v1679_v59  ;;  %v3694_v62 = vpop.f32.mrb[9].mxu1  ;;  %v1530_v59 = vpop.f32.mrb[7].mxu0 }
 0x2fc   : > { %v1682_v63 = vpop.f32.mrb[10].mxu1  ;;  %v5104_v62 = vadd.f32 %v1528_v58, %v5014_v44  ;;  %v4025_v58 = vld [vmem:[%s4847_s29 + $0xb0] ss:$8 sps:$4 sm:$0xff]  }
 0x2fd   : > { %v1728_v1 = vmul.f32 0.088388346, %v1682_v63  ;;  %v1733_v3 = vadd.f32 %v1731_v60, %v1727_v61  ;;  %v3695_v5 = vpop.f32.mrb[11].mxu1  ;;  %v5101_v61 = vadd.f32 %v1526_v57, %v5018_v46  ;;  %v5107_v63 = vadd.f32 %v1530_v59, %v5018_v46  ;;  %v4027_v57 = vld [vmem:[%s4847_s29 + $0xb4] ss:$8 sps:$4 sm:$0xff]  }
 0x2fe   : > { %v4030_v59 = vld [vmem:[%s4847_s29 + $0xc4] ss:$8 sps:$4 sm:$0xff]  }
 0x2ff   : > { %v1738_v7 = vsel %vm1737_vm4, %v1733_v3, -inf  ;;  %v1734_v11 = vadd.f32 %v1732_v0, %v1728_v1  ;;  %v1873_v1 = vpack.c.bf16 %v5107_v63, %v5101_v61 }
 0x300   : > { %1739 = vmax.xlane.f32.xlu0 %v1738_v7  ;;  %v992_v7 = vsub.s32 5, %v4997_v35 }
 0x301   : > { %v1741_v29 = vsel %vm1737_vm4, %v1734_v11, -inf }
 0x302   : > { %v1720_v12 = vpop.f32.mrb[12].mxu1  ;;  %v5119_v46 = vrot.slane %v5001_v37, %v992_v7 }
 0x303   : > { %v1729_v26 = vmul.f32 0.088388346, %v1720_v12  ;;  %v3700_v13 = vpop.f32.mrb[13].mxu1 }
 0x304   : > { %1742 = vmax.xlane.f32.xlu0 %v1741_v29  ;;  %v1723_v32 = vpop.f32.mrb[14].mxu1 }
 0x305   : > { %v1730_v14 = vmul.f32 0.088388346, %v1723_v32  ;;  %v3701_v15 = vpop.f32.mrb[15].mxu1  ;;  %v1735_v16 = vadd.f32 %v1731_v60, %v1729_v26  ;;  %v5098_v60 = vadd.f32 %v1524_v56, %v5014_v44  ;;  %v4022_v56 = vld [vmem:[%s4847_s29 + $0xa0] ss:$8 sps:$4 sm:$0xff]  }
 0x306   : > { %v3992_v15 = vld [vmem:[%s4847_s29] ss:$8 sps:$4 sm:$0xff]  }
 0x307   : > { %v1744_v17 = vsel %vm1737_vm4, %v1735_v16, -inf  ;;  %v1736_v18 = vadd.f32 %v1732_v0, %v1730_v14  ;;  %v1872_v0 = vpack.c.bf16 %v5104_v62, %v5098_v60 }
 0x308   : > { %1745 = vmax.xlane.f32.xlu1 %v1744_v17  ;;  %v3997_v17 = vld [vmem:[%s4847_s29 + $0x14] ss:$8 sps:$4 sm:$0xff]  }
 0x309   : > { %v1747_v19 = vsel %vm1737_vm4, %v1736_v18, -inf }
 0x30c   : > { %1748 = vmax.xlane.f32.xlu1 %v1747_v19  ;;  %v4000_v19 = vld [vmem:[%s4847_s29 + $0x24] ss:$8 sps:$4 sm:$0xff]  }
 0x318   : > { %v1620_v5 = vpop.f32.mrb[8].mxu0 }
 0x38d   : > { %v1740_v20 = vpop.xlane.xlu0 %1739 }
 0x38e   : > { %v1750_v21 = vsub.f32 %v1733_v3, %v1740_v20  ;;  %v988_v3 = vsub.s32 4, %v4997_v35  ;;  %v3998_v20 = vld [vmem:[%s4847_s29 + $0x20] ss:$8 sps:$4 sm:$0xff]  }
 0x390   : > { %v1754_v24 = vmul.f32 1.442695, %v1750_v21  ;;  %v5116_v44 = vrot.slane %v5001_v37, %v988_v3  ;;  %v4003_v21 = vld [vmem:[%s4847_s29 + $0x34] ss:$8 sps:$4 sm:$0xff]   ;;  %v4028_v3 = vld [vmem:[%s4847_s29 + $0xc0] ss:$8 sps:$4 sm:$0xff]  }
 0x391   : > { %v1743_v25 = vpop.xlane.xlu0 %1742 }
 0x392   : > { %4136 = vpow2.f32 %v1754_v24  ;;  %v1751_v34 = vsub.f32 %v1734_v11, %v1743_v25  ;;  %v1622_v11 = vpop.f32.mrb[9].mxu0  ;;  %v1621_v13 = vadd.f32 %v1620_v5, %v5116_v44  ;;  %v4001_v24 = vld [vmem:[%s4847_s29 + $0x30] ss:$8 sps:$4 sm:$0xff]   ;;  %v4006_v25 = vld [vmem:[%s4847_s29 + $0x44] ss:$8 sps:$4 sm:$0xff]  }
 0x393   : > { %v1624_v12 = vpop.f32.mrb[10].mxu0  ;;  %v5123_v29 = vadd.f32 %v1622_v11, %v5119_v46 }
 0x394   : > { %v1756_v36 = vmul.f32 1.442695, %v1751_v34  ;;  %v1626_v26 = vpop.f32.mrb[11].mxu0  ;;  %v1625_v35 = vadd.f32 %v1624_v12, %v5116_v44  ;;  %v4004_v34 = vld [vmem:[%s4847_s29 + $0x40] ss:$8 sps:$4 sm:$0xff]  }
 0x395   : > { %v1746_v38 = vpop.xlane.xlu1 %1745  ;;  %v5127_v32 = vadd.f32 %v1626_v26, %v5119_v46 }
 0x396   : > { %4138 = vpow2.f32 %v1756_v36  ;;  %v1752_v41 = vsub.f32 %v1735_v16, %v1746_v38  ;;  %v1643_v14 = vpack.c.bf16 %v1625_v35, %v1621_v13  ;;  %v3994_v16 = vld [vmem:[%s4847_s29 + $0x4] ss:$8 sps:$4 sm:$0xff]   ;;  %v4009_v36 = vld [vmem:[%s4847_s29 + $0x54] ss:$8 sps:$4 sm:$0xff]   ;;  %v4007_v38 = vld [vmem:[%s4847_s29 + $0x50] ss:$8 sps:$4 sm:$0xff]  }
 0x397   : > { %v1644_v37 = vpack.c.bf16 %v5127_v32, %v5123_v29  ;;  %2313 = vmatprep.subr.bf16.mxu0 %v3994_v16 }
 0x398   : > { %v1758_v42 = vmul.f32 1.442695, %v1752_v41  ;;  %3703 = vmatpush3.bf16.msra.mxu1 %v1643_v14  ;;  %2314 = vmatpush1.bf16.msra.mxu0 %v3992_v15  ;;  %v4012_v41 = vld [vmem:[%s4847_s29 + $0x64] ss:$8 sps:$4 sm:$0xff]  }
 0x399   : > { %v1749_v43 = vpop.xlane.xlu1 %1748  ;;  %3708 = vmatprep.subr.bf16.mxu1 %v4471_v33  ;;  %2315 = vmatprep.subr.bf16.mxu0 %v3997_v17 }
 0x39a   : > { %4140 = vpow2.f32 %v1758_v42  ;;  %v1753_v45 = vsub.f32 %v1736_v18, %v1749_v43  ;;  %v3995_v18 = vld [vmem:[%s4847_s29 + $0x10] ss:$8 sps:$4 sm:$0xff]   ;;  %v4010_v42 = vld [vmem:[%s4847_s29 + $0x60] ss:$8 sps:$4 sm:$0xff]   ;;  %v4015_v43 = vld [vmem:[%s4847_s29 + $0x74] ss:$8 sps:$4 sm:$0xff]  }
 0x39c   : > { %v5081_v47 = vpop.eup %4136  ;;  %v1760_v48 = vmul.f32 1.442695, %v1753_v45  ;;  %2316 = vmatpush1.bf16.msra.mxu0 %v3995_v18  ;;  %v4013_v45 = vld [vmem:[%s4847_s29 + $0x70] ss:$8 sps:$4 sm:$0xff]  }
 0x39d   : > { %v1762_v49 = vsel %vm1737_vm4, %v5081_v47, 0.0  ;;  %2317 = vmatprep.subr.bf16.mxu0 %v4000_v19  ;;  %v1965_v19 = vld [vmem:[#allocation3 + $0x10] sm:$0xff] }
 0x39e   : > { %4142 = vpow2.f32 %v1760_v48  ;;  %1763 = vadd.xlane.f32.xlu0 %v1762_v49  ;;  %v4018_v48 = vld [vmem:[%s4847_s29 + $0x84] ss:$8 sps:$4 sm:$0xff]   ;;  %v4016_v49 = vld [vmem:[%s4847_s29 + $0x80] ss:$8 sps:$4 sm:$0xff]  }
 0x3a0   : > { %v5085_v50 = vpop.eup %4138  ;;  %2318 = vmatpush1.bf16.msra.mxu0 %v3998_v20 }
 0x3a1   : > { %v1765_v51 = vsel %vm1737_vm4, %v5085_v50, 0.0  ;;  %2319 = vmatprep.subr.bf16.mxu0 %v4003_v21 }
 0x3a2   : > { %1766 = vadd.xlane.f32.xlu1 %v1765_v51  ;;  %v4021_v51 = vld [vmem:[%s4847_s29 + $0x94] ss:$8 sps:$4 sm:$0xff]  }
 0x3a4   : > { %v5089_v52 = vpop.eup %4140  ;;  %2320 = vmatpush1.bf16.msra.mxu0 %v4001_v24 }
 0x3a5   : > { %v1768_v53 = vsel %vm1737_vm4, %v5089_v52, 0.0  ;;  %2321 = vmatprep.subr.bf16.mxu0 %v4006_v25  ;;  %v1966_v25 = vld [vmem:[#allocation3 + $0x18] sm:$0xff] }
 0x3a6   : > { %1769 = vadd.xlane.f32.xlu0 %v1768_v53  ;;  %v4019_v53 = vld [vmem:[%s4847_s29 + $0x90] ss:$8 sps:$4 sm:$0xff]  }
 0x3a8   : > { %v5093_v54 = vpop.eup %4142  ;;  %2322 = vmatpush1.bf16.msra.mxu0 %v4004_v34 }
 0x3a9   : > { %v1771_v55 = vsel %vm1737_vm4, %v5093_v54, 0.0  ;;  %2323 = vmatprep.subr.bf16.mxu0 %v4009_v36 }
 0x3aa   : > { %1772 = vadd.xlane.f32.xlu1 %v1771_v55  ;;  %v4024_v55 = vld [vmem:[%s4847_s29 + $0xa4] ss:$8 sps:$4 sm:$0xff]  }
 0x3ac   : > { %2324 = vmatpush1.bf16.msra.mxu0 %v4007_v38 }
 0x3ad   : > { %2325 = vmatprep.subr.bf16.mxu0 %v4012_v41 }
 0x3b0   : > { %2326 = vmatpush1.bf16.msra.mxu0 %v4010_v42 }
 0x3b1   : > { %2327 = vmatprep.subr.bf16.mxu0 %v4015_v43 }
 0x3b4   : > { %2328 = vmatpush1.bf16.msra.mxu0 %v4013_v45 }
 0x3b5   : > { %2329 = vmatprep.subr.bf16.mxu0 %v4018_v48 }
 0x3b8   : > { %2330 = vmatpush1.bf16.msra.mxu0 %v4016_v49 }
 0x3b9   : > { %2331 = vmatprep.subr.bf16.mxu0 %v4021_v51 }
 0x3bc   : > { %2332 = vmatpush1.bf16.msra.mxu0 %v4019_v53 }
 0x3bd   : > { %2333 = vmatprep.subr.bf16.mxu0 %v4024_v55 }
 0x3c0   : > { %2334 = vmatpush1.bf16.msra.mxu0 %v4022_v56 }
 0x3c1   : > { %2335 = vmatprep.subr.bf16.mxu0 %v4027_v57 }
 0x3c4   : > { %2336 = vmatpush1.bf16.msra.mxu0 %v4025_v58 }
 0x3c5   : > { %2337 = vmatprep.subr.bf16.mxu0 %v4030_v59 }
 0x3c8   : > { %2338 = vmatpush1.bf16.msra.mxu0 %v4028_v3  ;;  %v1630_v3 = vpop.f32.mrb[12].mxu0 }
 0x3c9   : > { %2339 = vmatprep.subr.bf16.mxu0 %v4033_v2 }
 0x3cc   : > { %2340 = vmatpush1.bf16.msra.mxu0 %v4031_v6 }
 0x42b   : > { %v1764_v5 = vpop.xlane.xlu0 %1763 }
 0x42c   : > { %4144 = vrcp.f32 %v1764_v5  ;;  %v1631_v5 = vadd.f32 %v1630_v3, %v5116_v44 }
 0x42f   : > { %v1767_v7 = vpop.xlane.xlu1 %1766 }
 0x430   : > { %4146 = vrcp.f32 %v1767_v7  ;;  %v1632_v7 = vpop.f32.mrb[13].mxu0 }
 0x433   : > { %v1770_v11 = vpop.xlane.xlu0 %1769 }
 0x434   : > { %4148 = vrcp.f32 %v1770_v11  ;;  %v5202_v11 = vadd.f32 %v1632_v7, %v5119_v46 }
 0x436   : > { %v4145_v26 = vpop.eup %4144 }
 0x437   : > { %v1773_v12 = vpop.xlane.xlu1 %1772  ;;  %v1778_v35 = vmul.f32 %v4145_v26, %v5081_v47 }
 0x438   : > { %4150 = vrcp.f32 %v1773_v12  ;;  %v1634_v12 = vpop.f32.mrb[14].mxu0 }
 0x439   : > { %v1635_v26 = vadd.f32 %v1634_v12, %v5116_v44 }
 0x43a   : > { %v4147_v13 = vpop.eup %4146 }
 0x43b   : > { %v1779_v14 = vmul.f32 %v4147_v13, %v5085_v50  ;;  %v1636_v13 = vpop.f32.mrb[15].mxu0 }
 0x43d   : > { %v1782_v15 = vpack.c.bf16 %v1779_v14, %v1778_v35  ;;  %v5206_v35 = vadd.f32 %v1636_v13, %v5119_v46  ;;  %v1876_v14 = vpack.c.bf16 %v1635_v26, %v1631_v5 }
 0x43e   : > { %v4149_v16 = vpop.eup %4148 }
 0x43f   : > { %3705 = vmatmul.mubr.msk.bf16.vlgmr.msra.gmra.mrb[16].mxu1 %vm1737_vm4, %v1782_v15  ;;  %v1780_v47 = vmul.f32 %v4149_v16, %v5089_v52  ;;  %v4034_v52 = vld [vmem:[%s4847_s29 + $0xe0] ss:$8 sps:$4 sm:$0xff]   ;;  %v1877_v15 = vpack.c.bf16 %v5206_v35, %v5202_v11 }
 0x440   : > { %3709 = vmatpush3.bf16.msra.mxu1 %v1644_v37  ;;  %3710 = vmatprep.mubr.msk.bf16.mxu1 %vm4472_vm3, %v4471_v33 }
 0x441   : > { %3714 = vmatprep.subr.bf16.mxu1 %v4471_v33 }
 0x442   : > { %v4151_v17 = vpop.eup %4150 }
 0x443   : > { %v1781_v50 = vmul.f32 %v4151_v17, %v5093_v54 }
 0x445   : > { %v1783_v18 = vpack.c.bf16 %v1781_v50, %v1780_v47 }
 0x447   : > { %3711 = vmatmul.mubr.msk.bf16.vlgmr.msra.gmra.mrb[20].mxu1 %vm1737_vm4, %v1783_v18 }
 0x448   : > { %3716 = vmatprep.mubr.msk.bf16.mxu1 %vm4472_vm3, %v4471_v33 }
 0x449   : > { %3715 = vmatpush3.bf16.xpose.msra.mxu1 %v1874_v9  ;;  %v4036_v9 = vld [vmem:[%s4847_s29 + $0xe4] ss:$8 sps:$4 sm:$0xff]   ;;  %s5595_s29 = sld [smem:[#allocation33_spill]] }
 0x44a   : > { %3720 = vmatprep.subr.bf16.mxu1 %v4471_v33  ;;  %2341 = vmatprep.subr.bf16.mxu0 %v4036_v9 }
 0x44b   : > { %2342 = vmatpush1.bf16.msra.mxu0 %v4034_v52 }
 0x44c   : > { %2343 = vmatprep.subr.bf16.mxu0 %v4039_v4 }
 0x44f   : > { %2344 = vmatpush1.bf16.msra.mxu0 %v4037_v8  ;;  %s5596_s16 = scalar_lea.vmem %s5595_s29, %s4863_s22  ;;  %s5603_s22 = sld [smem:[#allocation22_spill]] }
 0x450   : > { %3717 = vmatmul.mubr.bf16.vlgmr.msra.gmra.mrb[24].mxu1 %v1872_v0 }
 0x451   : > { %3721 = vmatpush3.bf16.xpose.msra.mxu1 %v1875_v10  ;;  %3722 = vmatprep.mubr.msk.bf16.mxu1 %vm4472_vm3, %v4471_v33 }
 0x452   : > { %3726 = vmatprep.subr.bf16.mxu1 %v4471_v33 }
 0x455   : > { %p3658_p7 = scmp.ne.s32.totalorder %s5603_s22, 1 }
 0x458   : > { %3723 = vmatmul.mubr.bf16.vlgmr.msra.gmra.mrb[28].mxu1 %v1873_v1 }
 0x459   : > { %3728 = vmatprep.mubr.msk.bf16.mxu1 %vm4472_vm3, %v4471_v33  ;;  %3727 = vmatpush3.bf16.msra.mxu1 %v1876_v14 }
 0x45a   : > { %3732 = vmatprep.subr.bf16.mxu1 %v4471_v33 }
 0x512   : > { %v1821_v10 = vpop.f32.mrb[16].mxu1 }
 0x513   : > { %v3706_v54 = vpop.f32.mrb[17].mxu1 }
 0x514   : > { %v1824_v60 = vpop.f32.mrb[18].mxu1 }
 0x515   : > { %v2105_v61 = vpack.c.bf16 %v1824_v60, %v1821_v10  ;;  %v3707_v62 = vpop.f32.mrb[19].mxu1 }
 0x51a   : > { %v1865_v63 = vpop.f32.mrb[20].mxu1 }
 0x51b   : > { %v3712_v0 = vpop.f32.mrb[21].mxu1 }
 0x51c   : > { %v1868_v1 = vpop.f32.mrb[22].mxu1 }
 0x51d   : > { %v2106_v29 = vpack.c.bf16 %v1868_v1, %v1865_v63  ;;  %v3713_v32 = vpop.f32.mrb[23].mxu1  ;;  %v2141_v1 = vld [vmem:[%s5596_s16] sm:$0x3] }
 0x51e   : > { %v5224_v32 = vrot.slane %v2141_v1, %v5008_v40 }
 0x51f   : > { %2345 = vmatprep.mubr.bf16.mxu0 %v2106_v29  ;;  %v5221_v29 = vrot.slane %v2141_v1, %v5005_v39  ;;  %v4061_v1 = vld [vmem:[%s4853_s5 + $0x70] ss:$8 sps:$4 sm:$0xff]  }
 0x520   : > { %2346 = vmatmul.mubr.bf16.vlgmr.msra.gmra.mrb[16].mxu0 %v2105_v61 }
 0x523   : > { %v1912_v37 = vpop.f32.mrb[24].mxu1 }
 0x524   : > { %v1960_v20 = vmul.f32 0.088388346, %v1912_v37  ;;  %v3718_v21 = vpop.f32.mrb[25].mxu1 }
 0x525   : > { %v1915_v24 = vpop.f32.mrb[26].mxu1 }
 0x526   : > { %v1961_v34 = vmul.f32 0.088388346, %v1915_v24  ;;  %v3719_v36 = vpop.f32.mrb[27].mxu1  ;;  %v1967_v38 = vadd.f32 %v1965_v19, %v1960_v20 }
 0x528   : > { %v1971_v41 = vsel %vm1737_vm4, %v1967_v38, -inf  ;;  %v1968_v42 = vadd.f32 %v1966_v25, %v1961_v34 }
 0x529   : > { %1972 = vmax.xlane.f32.xlu0 %v1971_v41 }
 0x52a   : > { %v1974_v43 = vsel %vm1737_vm4, %v1968_v42, -inf }
 0x52b   : > { %1975 = vmax.xlane.f32.xlu1 %v1974_v43  ;;  %v1953_v45 = vpop.f32.mrb[28].mxu1 }
 0x52c   : > { %v1962_v48 = vmul.f32 0.088388346, %v1953_v45  ;;  %v3724_v49 = vpop.f32.mrb[29].mxu1  ;;  %v4185_v45 = vld [vmem:[#allocation2 + $0x18] sm:$0xff] }
 0x52d   : > { %v1956_v51 = vpop.f32.mrb[30].mxu1 }
 0x52e   : > { %v1963_v53 = vmul.f32 0.088388346, %v1956_v51  ;;  %v3725_v55 = vpop.f32.mrb[31].mxu1  ;;  %v1969_v56 = vadd.f32 %v1965_v19, %v1962_v48 }
 0x530   : > { %v1977_v57 = vsel %vm1737_vm4, %v1969_v56, -inf  ;;  %v1970_v58 = vadd.f32 %v1966_v25, %v1963_v53 }
 0x531   : > { %1978 = vmax.xlane.f32.xlu0 %v1977_v57 }
 0x532   : > { %v1980_v59 = vsel %vm1737_vm4, %v1970_v58, -inf }
 0x533   : > { %1981 = vmax.xlane.f32.xlu1 %v1980_v59 }
 0x5b6   : > { %v1973_v16 = vpop.xlane.xlu0 %1972 }
 0x5b7   : > { %v1983_v17 = vsub.f32 %v1967_v38, %v1973_v16  ;;  %v4184_v38 = vld [vmem:[#allocation2 + $0x8] sm:$0xff] }
 0x5b8   : > { %v1976_v47 = vpop.xlane.xlu1 %1975 }
 0x5b9   : > { %v1987_v50 = vmul.f32 1.442695, %v1983_v17  ;;  %v1984_v18 = vsub.f32 %v1968_v42, %v1976_v47 }
 0x5bb   : > { %4152 = vpow2.f32 %v1987_v50  ;;  %v1989_v2 = vmul.f32 1.442695, %v1984_v18 }
 0x5bd   : > { %4154 = vpow2.f32 %v1989_v2  ;;  %v4040_v2 = vld [vmem:[%s4853_s5] ss:$8 sps:$4 sm:$0xff]  }
 0x5be   : > { %v1979_v44 = vpop.xlane.xlu0 %1978 }
 0x5bf   : > { %v1985_v6 = vsub.f32 %v1969_v56, %v1979_v44  ;;  %v4042_v44 = vld [vmem:[%s4853_s5 + $0x4] ss:$8 sps:$4 sm:$0xff]  }
 0x5c0   : > { %v1982_v9 = vpop.xlane.xlu1 %1981 }
 0x5c1   : > { %v1991_v46 = vmul.f32 1.442695, %v1985_v6  ;;  %v1986_v52 = vsub.f32 %v1970_v58, %v1982_v9  ;;  %v4045_v6 = vld [vmem:[%s4853_s5 + $0x14] ss:$8 sps:$4 sm:$0xff]   ;;  %v4043_v9 = vld [vmem:[%s4853_s5 + $0x10] ss:$8 sps:$4 sm:$0xff]  }
 0x5c3   : > { %4156 = vpow2.f32 %v1991_v46  ;;  %v1993_v4 = vmul.f32 1.442695, %v1986_v52  ;;  %v4048_v46 = vld [vmem:[%s4853_s5 + $0x24] ss:$8 sps:$4 sm:$0xff]   ;;  %v4046_v52 = vld [vmem:[%s4853_s5 + $0x20] ss:$8 sps:$4 sm:$0xff]  }
 0x5c5   : > { %v4153_v8 = vpop.eup %4152  ;;  %4158 = vpow2.f32 %v1993_v4  ;;  %v4051_v4 = vld [vmem:[%s4853_s5 + $0x34] ss:$8 sps:$4 sm:$0xff]  }
 0x5c6   : > { %v1995_v10 = vsel %vm1737_vm4, %v4153_v8, 0.0 }
 0x5c7   : > { %v4155_v54 = vpop.eup %4154  ;;  %1996 = vadd.xlane.f32.xlu0 %v1995_v10  ;;  %v4054_v10 = vld [vmem:[%s4853_s5 + $0x44] ss:$8 sps:$4 sm:$0xff]  }
 0x5c8   : > { %v1998_v60 = vsel %vm1737_vm4, %v4155_v54, 0.0 }
 0x5c9   : > { %1999 = vadd.xlane.f32.xlu1 %v1998_v60  ;;  %v4057_v60 = vld [vmem:[%s4853_s5 + $0x54] ss:$8 sps:$4 sm:$0xff]  }
 0x5cd   : > { %v4157_v61 = vpop.eup %4156 }
 0x5ce   : > { %v2001_v62 = vsel %vm1737_vm4, %v4157_v61, 0.0 }
 0x5cf   : > { %v4159_v63 = vpop.eup %4158  ;;  %2002 = vadd.xlane.f32.xlu0 %v2001_v62  ;;  %v4060_v62 = vld [vmem:[%s4853_s5 + $0x64] ss:$8 sps:$4 sm:$0xff]  }
 0x5d0   : > { %v2004_v0 = vsel %vm1737_vm4, %v4159_v63, 0.0 }
 0x5d1   : > { %2005 = vadd.xlane.f32.xlu1 %v2004_v0  ;;  %v4063_v0 = vld [vmem:[%s4853_s5 + $0x74] ss:$8 sps:$4 sm:$0xff]  }
 0x5f3   : > { %v2347_v37 = vpop.f32.mrb[16].mxu0 }
 0x5f4   : > { %v2348_v19 = vadd.f32 %v2347_v37, %v5221_v29  ;;  %v2349_v20 = vpop.f32.mrb[17].mxu0  ;;  %v4066_v37 = vld [vmem:[%s4853_s5 + $0x84] ss:$8 sps:$4 sm:$0xff]  }
 0x5f5   : > { %v2350_v21 = vadd.f32 %v2349_v20, %v5224_v32  ;;  %v2351_v24 = vpop.f32.mrb[18].mxu0 }
 0x5f6   : > { %v5229_v25 = vadd.f32 %v2348_v19, %v4962_v22  ;;  %v2352_v34 = vadd.f32 %v2351_v24, %v5221_v29  ;;  %v2353_v36 = vpop.f32.mrb[19].mxu0  ;;  %v4064_v19 = vld [vmem:[%s4853_s5 + $0x80] ss:$8 sps:$4 sm:$0xff]  }
 0x5f7   : > { %v5232_v41 = vadd.f32 %v4184_v38, %v2350_v21  ;;  %v2354_v42 = vadd.f32 %v2353_v36, %v5224_v32 }
 0x5f8   : > { %v5236_v43 = vadd.f32 %v2352_v34, %v4964_v23 }
 0x5f9   : > { %v5238_v48 = vadd.f32 %v4185_v45, %v2354_v42  ;;  %v2376_v49 = vadd.f32 %v5232_v41, %v5229_v25 }
 0x5fb   : > { %2377 = vadd.xlane.f32.xlu0 %v2376_v49  ;;  %v2379_v22 = vadd.f32 %v5238_v48, %v5236_v43 }
 0x5fd   : > { %2380 = vadd.xlane.f32.xlu1 %v2379_v22 }
 0x654   : > { %v1997_v51 = vpop.xlane.xlu0 %1996 }
 0x655   : > { %4160 = vrcp.f32 %v1997_v51 }
 0x656   : > { %v2000_v53 = vpop.xlane.xlu1 %1999 }
 0x657   : > { %4162 = vrcp.f32 %v2000_v53 }
 0x65c   : > { %v2003_v55 = vpop.xlane.xlu0 %2002 }
 0x65d   : > { %4164 = vrcp.f32 %v2003_v55 }
 0x65e   : > { %v2006_v56 = vpop.xlane.xlu1 %2005 }
 0x65f   : > { %v4161_v23 = vpop.eup %4160  ;;  %4166 = vrcp.f32 %v2006_v56 }
 0x660   : > { %v2011_v58 = vmul.f32 %v4161_v23, %v4153_v8  ;;  %v4049_v8 = vld [vmem:[%s4853_s5 + $0x30] ss:$8 sps:$4 sm:$0xff]  }
 0x661   : > { %v4163_v57 = vpop.eup %4162 }
 0x662   : > { %v2012_v59 = vmul.f32 %v4163_v57, %v4155_v54  ;;  %v4052_v54 = vld [vmem:[%s4853_s5 + $0x40] ss:$8 sps:$4 sm:$0xff]  }
 0x664   : > { %v2015_v3 = vpack.c.bf16 %v2012_v59, %v2011_v58 }
 0x666   : > { %3729 = vmatmul.mubr.msk.bf16.vlgmr.msra.gmra.mrb[32].mxu1 %vm1737_vm4, %v2015_v3  ;;  %v4069_v3 = vld [vmem:[%s4853_s5 + $0x94] ss:$8 sps:$4 sm:$0xff]  }
 0x667   : > { %v4165_v5 = vpop.eup %4164  ;;  %3733 = vmatpush3.bf16.msra.mxu1 %v1877_v15  ;;  %3734 = vmatprep.mubr.msk.bf16.mxu1 %vm4472_vm3, %v4471_v33 }
 0x668   : > { %v2013_v12 = vmul.f32 %v4165_v5, %v4157_v61  ;;  %2687 = vmatprep.subr.bf16.mxu1 %v4042_v44  ;;  %v4055_v61 = vld [vmem:[%s4853_s5 + $0x50] ss:$8 sps:$4 sm:$0xff]  }
 0x669   : > { %v4167_v7 = vpop.eup %4166  ;;  %v4067_v5 = vld [vmem:[%s4853_s5 + $0x90] ss:$8 sps:$4 sm:$0xff]  }
 0x66a   : > { %v2014_v26 = vmul.f32 %v4167_v7, %v4159_v63  ;;  %v4058_v63 = vld [vmem:[%s4853_s5 + $0x60] ss:$8 sps:$4 sm:$0xff]   ;;  %v4072_v7 = vld [vmem:[%s4853_s5 + $0xa4] ss:$8 sps:$4 sm:$0xff]  }
 0x66c   : > { %v2016_v13 = vpack.c.bf16 %v2014_v26, %v2013_v12  ;;  %v4070_v12 = vld [vmem:[%s4853_s5 + $0xa0] ss:$8 sps:$4 sm:$0xff]   ;;  %v4075_v26 = vld [vmem:[%s4853_s5 + $0xb4] ss:$8 sps:$4 sm:$0xff]  }
 0x66e   : > { %3735 = vmatmul.mubr.msk.bf16.vlgmr.msra.gmra.mrb[36].mxu1 %vm1737_vm4, %v2016_v13  ;;  %v4073_v13 = vld [vmem:[%s4853_s5 + $0xb0] ss:$8 sps:$4 sm:$0xff]  }
 0x66f   : > { %2688 = vmatpush1.bf16.msra.mxu1 %v4040_v2 }
 0x670   : > { %2689 = vmatprep.subr.bf16.mxu1 %v4045_v6 }
 0x673   : > { %2690 = vmatpush1.bf16.msra.mxu1 %v4043_v9 }
 0x674   : > { %2691 = vmatprep.subr.bf16.mxu1 %v4048_v46 }
 0x677   : > { %2692 = vmatpush1.bf16.msra.mxu1 %v4046_v52 }
 0x678   : > { %2693 = vmatprep.subr.bf16.mxu1 %v4051_v4 }
 0x67b   : > { %2694 = vmatpush1.bf16.msra.mxu1 %v4049_v8 }
 0x67c   : > { %2695 = vmatprep.subr.bf16.mxu1 %v4054_v10 }
 0x67f   : > { %2696 = vmatpush1.bf16.msra.mxu1 %v4052_v54 }
 0x680   : > { %2697 = vmatprep.subr.bf16.mxu1 %v4057_v60 }
 0x683   : > { %2698 = vmatpush1.bf16.msra.mxu1 %v4055_v61 }
 0x684   : > { %2699 = vmatprep.subr.bf16.mxu1 %v4060_v62 }
 0x687   : > { %2700 = vmatpush1.bf16.msra.mxu1 %v4058_v63 }
 0x688   : > { %2701 = vmatprep.subr.bf16.mxu1 %v4063_v0  ;;  %v2378_v20 = vpop.xlane.xlu0 %2377 }
 0x689   : > { %v2389_v24 = vmul.f32 0.00390625, %v2378_v20  ;;  %v2374_v20 = vld [vmem:[%s785_s25] sm:$0x3] }
 0x68a   : > { %v2381_v21 = vpop.xlane.xlu1 %2380 }
 0x68b   : > { %2702 = vmatpush1.bf16.msra.mxu1 %v4061_v1  ;;  %v2390_v34 = vmul.f32 0.00390625, %v2381_v21  ;;  %v5271_v45 = vsub.f32 %v5229_v25, %v2389_v24  ;;  %v5274_v49 = vsub.f32 %v5232_v41, %v2389_v24  ;;  %v2375_v21 = vld [vmem:[%s789_s18] sm:$0x3]  ;;  %v5338_v24 = vrot.slane %v2374_v20, %v5005_v39 }
 0x68c   : > { %2703 = vmatprep.subr.bf16.mxu1 %v4066_v37 }
 0x68d   : > { %v5280_v23 = vsub.f32 %v5236_v43, %v2390_v34  ;;  %v5283_v57 = vsub.f32 %v5238_v48, %v2390_v34  ;;  %v2402_v43 = vmul.f32 %v5274_v49, %v5274_v49  ;;  %v5341_v34 = vrot.slane %v2374_v20, %v5008_v40 }
 0x68f   : > { %2704 = vmatpush1.bf16.msra.mxu1 %v4064_v19 }
 0x690   : > { %2705 = vmatprep.subr.bf16.mxu1 %v4069_v3  ;;  %v4099_v3 = vld [vmem:[%s4855_s28 + $0x34] ss:$8 sps:$4 sm:$0xff]  }
 0x693   : > { %2706 = vmatpush1.bf16.msra.mxu1 %v4067_v5  ;;  %v4097_v5 = vld [vmem:[%s4855_s28 + $0x30] ss:$8 sps:$4 sm:$0xff]  }
 0x694   : > { %2707 = vmatprep.subr.bf16.mxu1 %v4072_v7  ;;  %v4102_v7 = vld [vmem:[%s4855_s28 + $0x44] ss:$8 sps:$4 sm:$0xff]  }
 0x697   : > { %2708 = vmatpush1.bf16.msra.mxu1 %v4070_v12  ;;  %v4100_v12 = vld [vmem:[%s4855_s28 + $0x40] ss:$8 sps:$4 sm:$0xff]  }
 0x698   : > { %2709 = vmatprep.subr.bf16.mxu1 %v4075_v26  ;;  %v4105_v26 = vld [vmem:[%s4855_s28 + $0x54] ss:$8 sps:$4 sm:$0xff]  }
 0x69b   : > { %2710 = vmatpush1.bf16.msra.mxu1 %v4073_v13  ;;  %v4103_v13 = vld [vmem:[%s4855_s28 + $0x50] ss:$8 sps:$4 sm:$0xff]  }
 0x739   : > { %v2054_v14 = vpop.f32.mrb[32].mxu1 }
 0x73a   : > { %v3730_v16 = vpop.f32.mrb[33].mxu1 }
 0x73b   : > { %v2057_v17 = vpop.f32.mrb[34].mxu1  ;;  %v4076_v16 = vld [vmem:[%s4853_s5 + $0xc0] ss:$8 sps:$4 sm:$0xff]  }
 0x73c   : > { %v2107_v47 = vpack.c.bf16 %v2057_v17, %v2054_v14  ;;  %v3731_v11 = vpop.f32.mrb[35].mxu1  ;;  %v4078_v14 = vld [vmem:[%s4853_s5 + $0xc4] ss:$8 sps:$4 sm:$0xff]   ;;  %v4081_v17 = vld [vmem:[%s4853_s5 + $0xd4] ss:$8 sps:$4 sm:$0xff]  }
 0x73d   : > { %2711 = vmatprep.subr.bf16.mxu1 %v4078_v14  ;;  %v4082_v11 = vld [vmem:[%s4853_s5 + $0xe0] ss:$8 sps:$4 sm:$0xff]   ;;  %v4108_v14 = vld [vmem:[%s4855_s28 + $0x64] ss:$8 sps:$4 sm:$0xff]  }
 0x73e   : > { %2712 = vmatpush1.bf16.msra.mxu1 %v4076_v16  ;;  %v4106_v16 = vld [vmem:[%s4855_s28 + $0x60] ss:$8 sps:$4 sm:$0xff]  }
 0x73f   : > { %2713 = vmatprep.subr.bf16.mxu1 %v4081_v17  ;;  %v4111_v17 = vld [vmem:[%s4855_s28 + $0x74] ss:$8 sps:$4 sm:$0xff]  }
 0x741   : > { %v2098_v35 = vpop.f32.mrb[36].mxu1 }
 0x742   : > { %v3736_v15 = vpop.f32.mrb[37].mxu1 }
 0x743   : > { %v2101_v33 = vpop.f32.mrb[38].mxu1  ;;  %v4087_v15 = vld [vmem:[%s4853_s5 + $0xf4] ss:$8 sps:$4 sm:$0xff]  }
 0x744   : > { %v2108_v50 = vpack.c.bf16 %v2101_v33, %v2098_v35  ;;  %v3737_v18 = vpop.f32.mrb[39].mxu1  ;;  %v4084_v35 = vld [vmem:[%s4853_s5 + $0xe4] ss:$8 sps:$4 sm:$0xff]   ;;  %v4085_v33 = vld [vmem:[%s4853_s5 + $0xf0] ss:$8 sps:$4 sm:$0xff]  }
 0x746   : > { %2355 = vmatprep.mubr.bf16.mxu0 %v2108_v50 }
 0x747   : > { %2356 = vmatmul.mubr.bf16.gmra.mrb[20].mxu0 %v2107_v47  ;;  %v4079_v47 = vld [vmem:[%s4853_s5 + $0xd0] ss:$8 sps:$4 sm:$0xff]  }
 0x748   : > { %2714 = vmatpush1.bf16.msra.mxu1 %v4079_v47  ;;  %v4109_v47 = vld [vmem:[%s4855_s28 + $0x70] ss:$8 sps:$4 sm:$0xff]  }
 0x749   : > { %2715 = vmatprep.subr.bf16.mxu1 %v4084_v35  ;;  %v4112_v35 = vld [vmem:[%s4855_s28 + $0x80] ss:$8 sps:$4 sm:$0xff]  }
 0x74c   : > { %2716 = vmatpush1.bf16.msra.mxu1 %v4082_v11  ;;  %v4114_v11 = vld [vmem:[%s4855_s28 + $0x84] ss:$8 sps:$4 sm:$0xff]  }
 0x74d   : > { %2717 = vmatprep.subr.bf16.mxu1 %v4087_v15  ;;  %v4117_v15 = vld [vmem:[%s4855_s28 + $0x94] ss:$8 sps:$4 sm:$0xff]  }
 0x750   : > { %2718 = vmatpush1.bf16.msra.mxu1 %v4085_v33  ;;  %v4115_v33 = vld [vmem:[%s4855_s28 + $0x90] ss:$8 sps:$4 sm:$0xff]  }
 0x81a   : > { %v2357_v36 = vpop.f32.mrb[20].mxu0 }
 0x81b   : > { %v2358_v38 = vadd.f32 %v2357_v36, %v5221_v29  ;;  %v2359_v42 = vpop.f32.mrb[21].mxu0 }
 0x81c   : > { %v2360_v22 = vadd.f32 %v2359_v42, %v5224_v32  ;;  %v2361_v51 = vpop.f32.mrb[22].mxu0 }
 0x81d   : > { %v2370_v53 = vadd.f32 %v2358_v38, %v4982_v30  ;;  %v2362_v55 = vadd.f32 %v2361_v51, %v5221_v29  ;;  %v2363_v56 = vpop.f32.mrb[23].mxu0  ;;  %v2401_v29 = vmul.f32 %v5271_v45, %v5271_v45  ;;  %v5346_v51 = vrot.slane %v2375_v21, %v5005_v39 }
 0x81e   : > { %v2371_v25 = vadd.f32 %v2360_v22, %v4974_v27  ;;  %v2364_v41 = vadd.f32 %v2363_v56, %v5224_v32  ;;  %v2403_v27 = vmul.f32 %v5280_v23, %v5280_v23 }
 0x81f   : > { %v2372_v58 = vadd.f32 %v2362_v55, %v4984_v31  ;;  %v2404_v31 = vmul.f32 %v5283_v57, %v5283_v57 }
 0x820   : > { %v2373_v59 = vadd.f32 %v2364_v41, %v4976_v28  ;;  %v2382_v30 = vadd.f32 %v2371_v25, %v2370_v53  ;;  %v2409_v28 = vadd.f32 %v2402_v43, %v2401_v29  ;;  %v4088_v43 = vld [vmem:[%s4855_s28] ss:$8 sps:$4 sm:$0xff]  }
 0x821   : > { %v2412_v32 = vadd.f32 %v2404_v31, %v2403_v27  ;;  %v4093_v27 = vld [vmem:[%s4855_s28 + $0x14] ss:$8 sps:$4 sm:$0xff]   ;;  %v4091_v31 = vld [vmem:[%s4855_s28 + $0x10] ss:$8 sps:$4 sm:$0xff]  }
 0x822   : > { %2383 = vadd.xlane.f32.xlu0 %v2382_v30  ;;  %v2385_v48 = vadd.f32 %v2373_v59, %v2372_v58 }
 0x824   : > { %2386 = vadd.xlane.f32.xlu1 %v2385_v48  ;;  %v4090_v48 = vld [vmem:[%s4855_s28 + $0x4] ss:$8 sps:$4 sm:$0xff]  }
 0x825   : > { %2956 = vmatprep.subr.bf16.mxu0 %v4090_v48 }
 0x826   : > { %2410 = vadd.xlane.f32.xlu0 %v2409_v28  ;;  %2957 = vmatpush1.bf16.msra.mxu0 %v4088_v43  ;;  %v4096_v28 = vld [vmem:[%s4855_s28 + $0x24] ss:$8 sps:$4 sm:$0xff]  }
 0x827   : > { %2958 = vmatprep.subr.bf16.mxu0 %v4093_v27 }
 0x828   : > { %2413 = vadd.xlane.f32.xlu1 %v2412_v32  ;;  %v4094_v32 = vld [vmem:[%s4855_s28 + $0x20] ss:$8 sps:$4 sm:$0xff]  }
 0x82a   : > { %2959 = vmatpush1.bf16.msra.mxu0 %v4091_v31 }
 0x82b   : > { %2960 = vmatprep.subr.bf16.mxu0 %v4096_v28 }
 0x82e   : > { %2961 = vmatpush1.bf16.msra.mxu0 %v4094_v32 }
 0x82f   : > { %2962 = vmatprep.subr.bf16.mxu0 %v4099_v3 }
 0x832   : > { %2963 = vmatpush1.bf16.msra.mxu0 %v4097_v5 }
 0x833   : > { %2964 = vmatprep.subr.bf16.mxu0 %v4102_v7 }
 0x836   : > { %2965 = vmatpush1.bf16.msra.mxu0 %v4100_v12 }
 0x837   : > { %2966 = vmatprep.subr.bf16.mxu0 %v4105_v26 }
 0x83a   : > { %2967 = vmatpush1.bf16.msra.mxu0 %v4103_v13 }
 0x83b   : > { %2968 = vmatprep.subr.bf16.mxu0 %v4108_v14 }
 0x83e   : > { %2969 = vmatpush1.bf16.msra.mxu0 %v4106_v16 }
 0x83f   : > { %2970 = vmatprep.subr.bf16.mxu0 %v4111_v17 }
 0x842   : > { %2971 = vmatpush1.bf16.msra.mxu0 %v4109_v47 }
 0x843   : > { %2972 = vmatprep.subr.bf16.mxu0 %v4114_v11 }
 0x846   : > { %2973 = vmatpush1.bf16.msra.mxu0 %v4112_v35 }
 0x847   : > { %2974 = vmatprep.subr.bf16.mxu0 %v4117_v15 }
 0x84a   : > { %2975 = vmatpush1.bf16.msra.mxu0 %v4115_v33 }
 0x8af   : > { %v2384_v50 = vpop.xlane.xlu0 %2383 }
 0x8b0   : > { %v2391_v18 = vmul.f32 0.00390625, %v2384_v50  ;;  %v4120_v50 = vld [vmem:[%s4855_s28 + $0xa4] ss:$8 sps:$4 sm:$0xff]  }
 0x8b1   : > { %v2387_v2 = vpop.xlane.xlu1 %2386  ;;  %2976 = vmatprep.subr.bf16.mxu0 %v4120_v50 }
 0x8b2   : > { %v5311_v44 = vsub.f32 %v2370_v53, %v2391_v18  ;;  %v5313_v6 = vsub.f32 %v2371_v25, %v2391_v18  ;;  %v2392_v9 = vmul.f32 0.00390625, %v2387_v2  ;;  %v5349_v53 = vrot.slane %v2375_v21, %v5008_v40  ;;  %v4118_v18 = vld [vmem:[%s4855_s28 + $0xa0] ss:$8 sps:$4 sm:$0xff]   ;;  %v4123_v2 = vld [vmem:[%s4855_s28 + $0xb4] ss:$8 sps:$4 sm:$0xff]  }
 0x8b3   : > { %v2411_v46 = vpop.xlane.xlu0 %2410  ;;  %2977 = vmatpush1.bf16.msra.mxu0 %v4118_v18 }
 0x8b4   : > { %v5315_v52 = vsub.f32 %v2372_v58, %v2392_v9  ;;  %v5317_v4 = vsub.f32 %v2373_v59, %v2392_v9  ;;  %v2421_v8 = vmul.f32 0.00390625, %v2411_v46  ;;  %v2405_v10 = vmul.f32 %v5311_v44, %v5311_v44  ;;  %v4121_v9 = vld [vmem:[%s4855_s28 + $0xb0] ss:$8 sps:$4 sm:$0xff]   ;;  %2978 = vmatprep.subr.bf16.mxu0 %v4123_v2  ;;  %v4126_v46 = vld [vmem:[%s4855_s28 + $0xc4] ss:$8 sps:$4 sm:$0xff]  }
 0x8b5   : > { %v2414_v54 = vpop.xlane.xlu1 %2413  ;;  %v2406_v60 = vmul.f32 %v5313_v6, %v5313_v6 }
 0x8b6   : > { %v2425_v61 = vadd.f32 1e-05, %v2421_v8  ;;  %v2422_v62 = vmul.f32 0.00390625, %v2414_v54  ;;  %v2407_v63 = vmul.f32 %v5315_v52, %v5315_v52  ;;  %v2408_v0 = vmul.f32 %v5317_v4, %v5317_v4  ;;  %v4124_v8 = vld [vmem:[%s4855_s28 + $0xc0] ss:$8 sps:$4 sm:$0xff]  }
 0x8b7   : > { %v2415_v1 = vadd.f32 %v2406_v60, %v2405_v10  ;;  %2979 = vmatpush1.bf16.msra.mxu0 %v4121_v9  ;;  %v4129_v10 = vld [vmem:[%s4855_s28 + $0xd4] ss:$8 sps:$4 sm:$0xff]   ;;  %v4127_v54 = vld [vmem:[%s4855_s28 + $0xd0] ss:$8 sps:$4 sm:$0xff]   ;;  %v4132_v60 = vld [vmem:[%s4855_s28 + $0xe4] ss:$8 sps:$4 sm:$0xff]  }
 0x8b8   : > { %4168 = vrsqrt.f32 %v2425_v61  ;;  %v2426_v37 = vadd.f32 1e-05, %v2422_v62  ;;  %v2418_v19 = vadd.f32 %v2408_v0, %v2407_v63  ;;  %2980 = vmatprep.subr.bf16.mxu0 %v4126_v46  ;;  %v4130_v61 = vld [vmem:[%s4855_s28 + $0xe0] ss:$8 sps:$4 sm:$0xff]   ;;  %v4135_v62 = vld [vmem:[%s4855_s28 + $0xf4] ss:$8 sps:$4 sm:$0xff]  }
 0x8b9   : > { %2416 = vadd.xlane.f32.xlu0 %v2415_v1  ;;  %v4133_v63 = vld [vmem:[%s4855_s28 + $0xf0] ss:$8 sps:$4 sm:$0xff]  }
 0x8ba   : > { %4170 = vrsqrt.f32 %v2426_v37  ;;  %2419 = vadd.xlane.f32.xlu1 %v2418_v19 }
 0x8bb   : > { %2981 = vmatpush1.bf16.msra.mxu0 %v4124_v8 }
 0x8bc   : > { %2982 = vmatprep.subr.bf16.mxu0 %v4129_v10 }
 0x8bf   : > { %2983 = vmatpush1.bf16.msra.mxu0 %v4127_v54  ;;  %v2784_v54 = vld [vmem:[%s797_s12] sm:$0x3] }
 0x8c0   : > { %2984 = vmatprep.subr.bf16.mxu0 %v4132_v60  ;;  %v2789_v60 = vrot.slane %v2784_v54, %v5005_v39 }
 0x8c2   : > { %v4169_v36 = vpop.eup %4168 }
 0x8c3   : > { %v2433_v38 = vmul.f32 %v4169_v36, %v5271_v45  ;;  %v2434_v42 = vmul.f32 %v4169_v36, %v5274_v49  ;;  %2985 = vmatpush1.bf16.msra.mxu0 %v4130_v61  ;;  %v2793_v61 = vrot.slane %v2784_v54, %v5008_v40 }
 0x8c4   : > { %v4171_v22 = vpop.eup %4170  ;;  %2986 = vmatprep.subr.bf16.mxu0 %v4135_v62 }
 0x8c5   : > { %v2435_v55 = vmul.f32 %v4171_v22, %v5280_v23  ;;  %v2436_v56 = vmul.f32 %v4171_v22, %v5283_v57  ;;  %v2453_v25 = vmul.f32 %v5341_v34, %v2434_v42  ;;  %v2452_v45 = vmul.f32 %v5338_v24, %v2433_v38 }
 0x8c7   : > { %v2455_v49 = vmul.f32 %v5341_v34, %v2436_v56  ;;  %v2454_v41 = vmul.f32 %v5338_v24, %v2435_v55  ;;  %v5358_v58 = vadd.f32 %v5349_v53, %v2453_v25  ;;  %v5364_v23 = vadd.f32 %v5346_v51, %v2452_v45  ;;  %2987 = vmatpush1.bf16.msra.mxu0 %v4133_v63 }
 0x8c9   : > { %v5361_v59 = vadd.f32 %v5349_v53, %v2455_v49  ;;  %v5367_v57 = vadd.f32 %v5346_v51, %v2454_v41 }
 0x8cb   : > { %v2480_v30 = vpack.c.bf16 %v5361_v59, %v5358_v58  ;;  %v2479_v29 = vpack.c.bf16 %v5367_v57, %v5364_v23 }
 0x8cd   : > { %2719 = vmatprep.mubr.bf16.mxu1 %v2480_v30 }
 0x8ce   : > { %2720 = vmatmul.mubr.bf16.vlgmr.msra.gmra.mrb[40].mxu1 %v2479_v29 }
 0x946   : > { %v2417_v0 = vpop.xlane.xlu0 %2416 }
 0x947   : > { %v2423_v1 = vmul.f32 0.00390625, %v2417_v0  ;;  %v2420_v37 = vpop.xlane.xlu1 %2419 }
 0x948   : > { %v2424_v19 = vmul.f32 0.00390625, %v2420_v37 }
 0x949   : > { %v2427_v20 = vadd.f32 1e-05, %v2423_v1 }
 0x94a   : > { %v2428_v21 = vadd.f32 1e-05, %v2424_v19 }
 0x94b   : > { %4172 = vrsqrt.f32 %v2427_v20 }
 0x94c   : > { %4174 = vrsqrt.f32 %v2428_v21 }
 0x955   : > { %v4173_v36 = vpop.eup %4172 }
 0x956   : > { %v4175_v38 = vpop.eup %4174  ;;  %v2438_v42 = vmul.f32 %v4173_v36, %v5313_v6  ;;  %v2437_v22 = vmul.f32 %v4173_v36, %v5311_v44 }
 0x957   : > { %v2440_v55 = vmul.f32 %v4175_v38, %v5317_v4  ;;  %v2439_v56 = vmul.f32 %v4175_v38, %v5315_v52 }
 0x958   : > { %v2457_v25 = vmul.f32 %v5341_v34, %v2438_v42  ;;  %v2456_v45 = vmul.f32 %v5338_v24, %v2437_v22 }
 0x959   : > { %v2459_v49 = vmul.f32 %v5341_v34, %v2440_v55  ;;  %v2458_v41 = vmul.f32 %v5338_v24, %v2439_v56  ;;  %v2515_v24 = vld [vmem:[%s793_s1] sm:$0x3] }
 0x95a   : > { %v5414_v30 = vadd.f32 %v5349_v53, %v2457_v25  ;;  %v5420_v44 = vadd.f32 %v5346_v51, %v2456_v45  ;;  %v2524_v29 = vrot.slane %v2515_v24, %v5008_v40 }
 0x95b   : > { %v5417_v6 = vadd.f32 %v5349_v53, %v2459_v49  ;;  %v5423_v4 = vadd.f32 %v5346_v51, %v2458_v41  ;;  %v2520_v53 = vrot.slane %v2515_v24, %v5005_v39 }
 0x95d   : > { %v2482_v52 = vpack.c.bf16 %v5417_v6, %v5414_v30  ;;  %v2481_v34 = vpack.c.bf16 %v5423_v4, %v5420_v44 }
 0x95f   : > { %2729 = vmatprep.mubr.bf16.mxu1 %v2482_v52 }
 0x960   : > { %2730 = vmatmul.mubr.bf16.gmra.mrb[44].mxu1 %v2481_v34 }
 0x9a1   : > { %v2721_v43 = vpop.f32.mrb[40].mxu1 }
 0x9a2   : > { %v2722_v51 = vadd.f32 %v2721_v43, %v2520_v53  ;;  %v2723_v48 = vpop.f32.mrb[41].mxu1 }
 0x9a3   : > { %v2724_v27 = vadd.f32 %v2723_v48, %v2524_v29  ;;  %v2725_v31 = vpop.f32.mrb[42].mxu1 }
 0x9a4   : > { %v2726_v28 = vadd.f32 %v2725_v31, %v2520_v53  ;;  %v2727_v32 = vpop.f32.mrb[43].mxu1  ;;  %v2740_v5 = vmax.f32 %v2722_v51, 0.0 }
 0x9a5   : > { %v2728_v3 = vadd.f32 %v2727_v32, %v2524_v29  ;;  %v2741_v12 = vmax.f32 %v2724_v27, 0.0 }
 0x9a6   : > { %v2742_v7 = vmax.f32 %v2726_v28, 0.0 }
 0x9a7   : > { %v2743_v26 = vmax.f32 %v2728_v3, 0.0 }
 0x9a8   : > { %v2748_v13 = vpack.c.bf16 %v2742_v7, %v2740_v5 }
 0x9a9   : > { %v2749_v14 = vpack.c.bf16 %v2743_v26, %v2741_v12 }
 0x9ab   : > { %2988 = vmatprep.mubr.bf16.mxu0 %v2749_v14 }
 0x9ac   : > { %2989 = vmatmul.mubr.bf16.vlgmr.msra.gmra.mrb[24].mxu0 %v2748_v13 }
 0xa33   : > { %v2731_v16 = vpop.f32.mrb[44].mxu1 }
 0xa34   : > { %v2732_v17 = vadd.f32 %v2731_v16, %v2520_v53  ;;  %v2733_v47 = vpop.f32.mrb[45].mxu1 }
 0xa35   : > { %v2734_v11 = vadd.f32 %v2733_v47, %v2524_v29  ;;  %v2735_v35 = vpop.f32.mrb[46].mxu1 }
 0xa36   : > { %v2736_v15 = vadd.f32 %v2735_v35, %v2520_v53  ;;  %v2737_v33 = vpop.f32.mrb[47].mxu1  ;;  %v2744_v18 = vmax.f32 %v2732_v17, 0.0 }
 0xa37   : > { %v2738_v50 = vadd.f32 %v2737_v33, %v2524_v29  ;;  %v2745_v9 = vmax.f32 %v2734_v11, 0.0 }
 0xa38   : > { %v2746_v2 = vmax.f32 %v2736_v15, 0.0 }
 0xa39   : > { %v2747_v46 = vmax.f32 %v2738_v50, 0.0 }
 0xa3a   : > { %v2750_v8 = vpack.c.bf16 %v2746_v2, %v2744_v18 }
 0xa3b   : > { %v2751_v10 = vpack.c.bf16 %v2747_v46, %v2745_v9 }
 0xa3d   : > { %2998 = vmatprep.mubr.bf16.mxu0 %v2751_v10 }
 0xa3e   : > { %2999 = vmatmul.mubr.bf16.gmra.mrb[28].mxu0 %v2750_v8 }
 0xa7f   : > { %v2990_v62 = vpop.f32.mrb[24].mxu0 }
 0xa80   : > { %v2991_v63 = vadd.f32 %v2990_v62, %v2789_v60  ;;  %v2992_v0 = vpop.f32.mrb[25].mxu0  ;;  %v3017_v62 = vld [vmem:[%s801_s27] sm:$0x3] }
 0xa81   : > { %v2993_v1 = vadd.f32 %v2992_v0, %v2793_v61  ;;  %v2994_v37 = vpop.f32.mrb[26].mxu0  ;;  %v3087_v0 = vrot.slane %v3017_v62, %v5005_v39 }
 0xa82   : > { %v3009_v19 = vadd.f32 %v2991_v63, %v5364_v23  ;;  %v2995_v20 = vadd.f32 %v2994_v37, %v2789_v60  ;;  %v2996_v21 = vpop.f32.mrb[27].mxu0  ;;  %v3018_v63 = vld [vmem:[%s805_s26] sm:$0x3] }
 0xa83   : > { %v3010_v36 = vadd.f32 %v2993_v1, %v5358_v58  ;;  %v2997_v38 = vadd.f32 %v2996_v21, %v2793_v61  ;;  %v3091_v1 = vrot.slane %v3017_v62, %v5008_v40  ;;  %v3110_v21 = vrot.slane %v3018_v63, %v5008_v40 }
 0xa84   : > { %v3011_v42 = vadd.f32 %v2995_v20, %v5367_v57  ;;  %v3106_v20 = vrot.slane %v3018_v63, %v5005_v39 }
 0xa85   : > { %v3012_v22 = vadd.f32 %v2997_v38, %v5361_v59  ;;  %v3019_v55 = vadd.f32 %v3010_v36, %v3009_v19 }
 0xa87   : > { %3020 = vadd.xlane.f32.xlu0 %v3019_v55  ;;  %v3022_v56 = vadd.f32 %v3012_v22, %v3011_v42 }
 0xa89   : > { %3023 = vadd.xlane.f32.xlu1 %v3022_v56 }
 0xb11   : > { %v3000_v25 = vpop.f32.mrb[28].mxu0 }
 0xb12   : > { %v3001_v45 = vadd.f32 %v3000_v25, %v2789_v60  ;;  %v3002_v49 = vpop.f32.mrb[29].mxu0 }
 0xb13   : > { %v3003_v41 = vadd.f32 %v3002_v49, %v2793_v61  ;;  %v3004_v52 = vpop.f32.mrb[30].mxu0 }
 0xb14   : > { %v3013_v23 = vadd.f32 %v3001_v45, %v5420_v44  ;;  %v3005_v34 = vadd.f32 %v3004_v52, %v2789_v60  ;;  %v3006_v24 = vpop.f32.mrb[31].mxu0  ;;  %v3021_v53 = vpop.xlane.xlu0 %3020 }
 0xb15   : > { %v3014_v58 = vadd.f32 %v3003_v41, %v5414_v30  ;;  %v3007_v29 = vadd.f32 %v3006_v24, %v2793_v61  ;;  %v3031_v57 = vmul.f32 0.00390625, %v3021_v53 }
 0xb16   : > { %v3015_v59 = vadd.f32 %v3005_v34, %v5423_v4  ;;  %v3024_v43 = vpop.xlane.xlu1 %3023 }
 0xb17   : > { %v3016_v51 = vadd.f32 %v3007_v29, %v5417_v6  ;;  %v3035_v48 = vsub.f32 %v3009_v19, %v3031_v57  ;;  %v3036_v27 = vsub.f32 %v3010_v36, %v3031_v57  ;;  %v3032_v31 = vmul.f32 0.00390625, %v3024_v43 }
 0xb18   : > { %v3025_v28 = vadd.f32 %v3014_v58, %v3013_v23 }
 0xb19   : > { %v3037_v32 = vsub.f32 %v3011_v42, %v3032_v31  ;;  %v3038_v3 = vsub.f32 %v3012_v22, %v3032_v31  ;;  %v3028_v5 = vadd.f32 %v3016_v51, %v3015_v59  ;;  %v3043_v44 = vmul.f32 %v3035_v48, %v3035_v48 }
 0xb1a   : > { %3026 = vadd.xlane.f32.xlu0 %v3025_v28  ;;  %v3044_v7 = vmul.f32 %v3036_v27, %v3036_v27 }
 0xb1b   : > { %3029 = vadd.xlane.f32.xlu1 %v3028_v5  ;;  %v3045_v12 = vmul.f32 %v3037_v32, %v3037_v32  ;;  %v3046_v30 = vmul.f32 %v3038_v3, %v3038_v3 }
 0xb1c   : > { %v3051_v26 = vadd.f32 %v3044_v7, %v3043_v44 }
 0xb1d   : > { %v3054_v13 = vadd.f32 %v3046_v30, %v3045_v12 }
 0xb1e   : > { %3052 = vadd.xlane.f32.xlu0 %v3051_v26 }
 0xb1f   : > { %3055 = vadd.xlane.f32.xlu1 %v3054_v13 }
 0xba7   : > { %v3027_v4 = vpop.xlane.xlu0 %3026 }
 0xba8   : > { %v3033_v14 = vmul.f32 0.00390625, %v3027_v4  ;;  %v3030_v6 = vpop.xlane.xlu1 %3029 }
 0xba9   : > { %v3034_v16 = vmul.f32 0.00390625, %v3030_v6 }
 0xbaa   : > { %v3039_v17 = vsub.f32 %v3013_v23, %v3033_v14  ;;  %v3040_v47 = vsub.f32 %v3014_v58, %v3033_v14 }
 0xbab   : > { %v3041_v11 = vsub.f32 %v3015_v59, %v3034_v16  ;;  %v3042_v35 = vsub.f32 %v3016_v51, %v3034_v16  ;;  %v3053_v15 = vpop.xlane.xlu0 %3052 }
 0xbac   : > { %v3063_v33 = vmul.f32 0.00390625, %v3053_v15  ;;  %v3056_v50 = vpop.xlane.xlu1 %3055  ;;  %v3047_v18 = vmul.f32 %v3039_v17, %v3039_v17  ;;  %v3048_v2 = vmul.f32 %v3040_v47, %v3040_v47 }
 0xbad   : > { %v3064_v9 = vmul.f32 0.00390625, %v3056_v50  ;;  %v3049_v46 = vmul.f32 %v3041_v11, %v3041_v11  ;;  %v3050_v8 = vmul.f32 %v3042_v35, %v3042_v35 }
 0xbae   : > { %v3067_v10 = vadd.f32 1e-05, %v3063_v33  ;;  %v3057_v54 = vadd.f32 %v3048_v2, %v3047_v18 }
 0xbaf   : > { %v3068_v60 = vadd.f32 1e-05, %v3064_v9  ;;  %v3060_v61 = vadd.f32 %v3050_v8, %v3049_v46 }
 0xbb0   : > { %4176 = vrsqrt.f32 %v3067_v10  ;;  %3058 = vadd.xlane.f32.xlu0 %v3057_v54 }
 0xbb1   : > { %4178 = vrsqrt.f32 %v3068_v60  ;;  %3061 = vadd.xlane.f32.xlu1 %v3060_v61 }
 0xbba   : > { %v4177_v37 = vpop.eup %4176 }
 0xbbb   : > { %v4179_v19 = vpop.eup %4178  ;;  %v3075_v36 = vmul.f32 %v4177_v37, %v3035_v48  ;;  %v3076_v38 = vmul.f32 %v4177_v37, %v3036_v27 }
 0xbbc   : > { %v3077_v42 = vmul.f32 %v4179_v19, %v3037_v32  ;;  %v3078_v22 = vmul.f32 %v4179_v19, %v3038_v3 }
 0xbbd   : > { %v3094_v55 = vmul.f32 %v3087_v0, %v3075_v36  ;;  %v3095_v56 = vmul.f32 %v3091_v1, %v3076_v38 }
 0xbbe   : > { %v3096_v25 = vmul.f32 %v3087_v0, %v3077_v42  ;;  %v3097_v45 = vmul.f32 %v3091_v1, %v3078_v22 }
 0xbbf   : > { %v3113_v49 = vadd.f32 %v3106_v20, %v3094_v55  ;;  %v3114_v41 = vadd.f32 %v3110_v21, %v3095_v56 }
 0xbc0   : > { %v3115_v52 = vadd.f32 %v3106_v20, %v3096_v25  ;;  %v3116_v23 = vadd.f32 %v3110_v21, %v3097_v45 }
 0xbc1   : > { %3121 = vst [vmem:[#allocation2] sm:$0xff] %v3113_v49  ;;  %3122 = vst [vmem:[#allocation2 + $0x8] sm:$0xff] %v3114_v41  ;;  %v3670_v12 = vpack.c.bf16 (!%p3658_p7), %v3114_v41, %v3113_v49 }
 0xbc2   : > { %3123 = vst [vmem:[#allocation2 + $0x10] sm:$0xff] %v3115_v52  ;;  %3124 = vst [vmem:[#allocation2 + $0x18] sm:$0xff] %v3116_v23  ;;  %v3671_v30 = vpack.c.bf16 (!%p3658_p7), %v3116_v23, %v3115_v52 }
 0xbc3   : > { %3157 = vst [vmem:[#allocation15] sm:$0xff] (!%p3658_p7), %v3670_v12 }
 0xbc4   : > { %3158 = vst [vmem:[#allocation15 + $0x8] sm:$0xff] (!%p3658_p7), %v3671_v30 }
 0xc3d   : > { %v3059_v34 = vpop.xlane.xlu0 %3058 }
 0xc3e   : > { %v3065_v39 = vmul.f32 0.00390625, %v3059_v34  ;;  %v3062_v24 = vpop.xlane.xlu1 %3061 }
 0xc3f   : > { %v3066_v40 = vmul.f32 0.00390625, %v3062_v24 }
 0xc40   : > { %v3069_v53 = vadd.f32 1e-05, %v3065_v39 }
 0xc41   : > { %v3070_v58 = vadd.f32 1e-05, %v3066_v40 }
 0xc42   : > { %4180 = vrsqrt.f32 %v3069_v53 }
 0xc43   : > { %4182 = vrsqrt.f32 %v3070_v58 }
 0xc4c   : > { %v4181_v29 = vpop.eup %4180 }
 0xc4d   : > { %v4183_v57 = vpop.eup %4182  ;;  %v3079_v59 = vmul.f32 %v4181_v29, %v3039_v17  ;;  %v3080_v43 = vmul.f32 %v4181_v29, %v3040_v47 }
 0xc4e   : > { %v3081_v51 = vmul.f32 %v4183_v57, %v3041_v11  ;;  %v3082_v48 = vmul.f32 %v4183_v57, %v3042_v35  ;;  %3132 = sbr.rel (%p3658_p7) target bundleno = 3159 (0xc57), region = 108 }
 0xc4f   : > { %v3098_v27 = vmul.f32 %v3087_v0, %v3079_v59  ;;  %v3099_v31 = vmul.f32 %v3091_v1, %v3080_v43 }
 0xc50   : > { %v3100_v28 = vmul.f32 %v3087_v0, %v3081_v51  ;;  %v3101_v32 = vmul.f32 %v3091_v1, %v3082_v48 }
 0xc51   : > { %v3117_v3 = vadd.f32 %v3106_v20, %v3098_v27  ;;  %v3118_v5 = vadd.f32 %v3110_v21, %v3099_v31 }
 0xc52   : > { %v3119_v44 = vadd.f32 %v3106_v20, %v3100_v28  ;;  %v3120_v7 = vadd.f32 %v3110_v21, %v3101_v32 }
 0xc53   : > { %3125 = vst [vmem:[#allocation2 + $0x20] sm:$0xff] %v3117_v3  ;;  %3126 = vst [vmem:[#allocation2 + $0x28] sm:$0xff] %v3118_v5  ;;  %v3672_v26 = vpack.c.bf16 (!%p3658_p7), %v3118_v5, %v3117_v3 }
 0xc54   : > { %3127 = vst [vmem:[#allocation2 + $0x30] sm:$0xff] %v3119_v44  ;;  %3128 = vst [vmem:[#allocation2 + $0x38] sm:$0xff] %v3120_v7  ;;  %v3673_v13 = vpack.c.bf16 (!%p3658_p7), %v3120_v7, %v3119_v44 }
 0xc55   : > { %3159 = vst [vmem:[#allocation15 + $0x10] sm:$0xff] %v3672_v26 }
 0xc56   : > { %3160 = vst [vmem:[#allocation15 + $0x18] sm:$0xff] %v3673_v13 }
 0xc57 PF: > { %p3785_p10 = scmp.eq.s32.totalorder %s4688_s20, 1  ;;  %s4473_s27 = smov [#allocation15]  }
 0xc58   : > { %s3171_s26 = sshll.u32 %s4473_s27, 4  ;;  %s3172_s26 = int_to_ptr.vmem [resolvable:$true] %s3171_s26 }
 0xc59   : > { %s4364_s3 = scalar_lea.vmem %s3172_s26, 512  ;;  %p4371_p0 = scmp.lt.s32.totalorder %s3172_s26, %s3172_s26 }
 0xc5a   : > { %p4365_p1 = scmp.ne.s32.totalorder %s3172_s26, %s4364_s3  ;;  %p4372_p5 = scmp.lt.s32.totalorder %s4364_s3, %s4364_s3 }
 0xc5c   : > { %p4366_p2 = pnand %p4365_p1, %p3785_p10  ;;  %p4373_p11 = por %p4372_p5, %p4371_p0 }
 0xc5e   : > { %p4367_p13 = pneg %p4366_p2 }
 0xc60   : > { %p4374_p8 = pnand %p4373_p11, %p4367_p13 }
 0xc62   : > { %4377 = shalt.err (!%p4374_p8)
}
 0xc63   : > { %s5604_s23 = sld [smem:[#allocation42_spill]] }
 0xc69   : > { %s4378_s7 = scalar_lea.hbm %s5604_s23, 512 }
 0xc6a   : > { %p4379_p4 = scmp.ne.s32.totalorder %s5604_s23, %s4378_s7  ;;  %p4384_p12 = scmp.lt.u32.totalorder %s4378_s7, %s5604_s23 }
 0xc6c   : > { %p4380_p6 = pnand %p4379_p4, %p3785_p10 }
 0xc6e   : > { %p4381_p3 = pneg %p4380_p6 }
 0xc70   : > { %p4386_p9 = pnand %p4384_p12, %p4381_p3 }
 0xc72   : > { %4389 = shalt.err (!%p4386_p9)
}
 0xc73   : > { %s4474_s19 = smov 128   ;;  %s4475_s24 = smov 8  }
 0xc74   : > { %3759 = dma.vmem_to_hbm [thread:$0]  (%p3785_p10), %s3172_s26, 512, %s5604_s23, [#allocation6], %s4474_s19, %s4474_s19, %s4475_s24  }
 0xc75   : > { %4431 = dma.done.wait (%p3785_p10), [#allocation6], 512  }
 0xc76   : > { %4433 = vsyncadd (%p3785_p10), [#allocation6], 4294966784 }
 0xc77 PF: > { %s5605_s28 = sld [smem:[#allocation24_spill]]  ;;  %s5606_s25 = sld [smem:[#allocation21_spill]] }
 0xc78   : > { %s5607_s15 = sld [smem:[#allocation26_spill]]  ;;  %s5608_s16 = sld [smem:[#allocation23_spill]] }
 0xc79   : > { %s5609_s17 = sld [smem:[#allocation25_spill]]  ;;  %s5610_s29 = smov %s4440_s30 }
 0xc7d   : > { %s35_s18 = sadd.s32 1, %s5605_s28   ;;  %s5611_s30 = smov %s5606_s25 }
 0xc7e   : > { %p32_p7 = scmp.ge.s32.totalorder %s35_s18, 4  }
 0xc80   :  { %34 = sbr.rel (!%p32_p7) target bundleno = 26 (0x1a), region = 201 }
 0xc87   :  { %3187 = vsyncpa [#allocation5], 1 }
 0xc88   :  { %3189 = vsyncpa [#allocation5 + $0x1], 1 }
 0xc89   :  { %3190 = vsyncpa [#allocation8], 1 }
 0xc8a   :  { %3192 = vsyncpa [#allocation8 + $0x1], 1 }
 0xc8b   :  { %3193 = vsyncpa [#allocation11], 1 }
 0xc8c   :  { %3195 = vsyncpa [#allocation11 + $0x1], 1 }
 0xc8d   :  { %3196 = vsyncpa [#allocation14], 1 }
 0xc8e   :  { %3198 = vsyncpa [#allocation14 + $0x1], 1 }
 0xc8f   :  { %3199 = vsyncpa [#allocation6], 1 }
 0xc90   :  { %3201 = vsyncpa [#allocation6 + $0x1], 1 }

</bundles_post_ra>
